<compile_context>
chip_gen: v7x
topology: tpu7x:2x2x1
jax: 0.10.0
libtpu: 0.0.40
codegen_flags: <defaults>
</compile_context>

<pallas_src>
import functools

import jax
import jax.numpy as jnp
from jax import lax
from jax.experimental import pallas as pl
from jax.experimental.pallas import tpu as pltpu


def prnn_kernel(
    x_ref,       # (T, B, I)   full time-major input, resident in VMEM
    w0_ref,      # (I+H, 4H)   [weight_ih_l0.T ; weight_hh_l0.T]
    b0_ref,      # (1, 4H)     bias_ih_l0 + bias_hh_l0
    w1_ref,      # (2H, 4H)    [weight_ih_l1.T ; weight_hh_l1.T]
    b1_ref,      # (1, 4H)     bias_ih_l1 + bias_hh_l1
    wlin_ref,    # (H, Opad)   linear head weight (lane-padded)
    blin_ref,    # (1, Opad)   linear head bias   (lane-padded)
    out_ref,     # (B, Opad)
    *, seq_len, hidden, batch,
):
    H = hidden

    # Hoist weight loads and bias broadcasts out of the time loop.
    w0 = w0_ref[...]
    w1 = w1_ref[...]
    bias0 = jnp.broadcast_to(b0_ref[...], (batch, 4 * H))
    bias1 = jnp.broadcast_to(b1_ref[...], (batch, 4 * H))

    def cell(xh, c, w, bias):
        # One fused MXU matmul per cell: gates = [x_in, h_prev] @ [W_ih; W_hh].
        gates = jnp.dot(xh, w, preferred_element_type=jnp.float32) + bias
        i = jax.nn.sigmoid(gates[:, 0 * H:1 * H])
        f = jax.nn.sigmoid(gates[:, 1 * H:2 * H])
        g = jnp.tanh(gates[:, 2 * H:3 * H])
        o = jax.nn.sigmoid(gates[:, 3 * H:4 * H])
        c_new = f * c + i * g
        h_new = o * jnp.tanh(c_new)
        return h_new, c_new

    def step(t, carry):
        h1, c1, h2, c2 = carry
        x_t = x_ref[t]  # (B, I)
        h1, c1 = cell(jnp.concatenate([x_t, h1], axis=1), c1, w0, bias0)
        h2, c2 = cell(jnp.concatenate([h1, h2], axis=1), c2, w1, bias1)
        return (h1, c1, h2, c2)

    z = jnp.zeros((batch, H), jnp.float32)
    # Fully unrolled for small fixed T (LLO scheduler visibility, no loop overhead).
    _, _, h2, _ = lax.fori_loop(0, seq_len, step, (z, z, z, z), unroll=True)

    # ReLU on the last-timestep hidden state, then lane-dense linear head.
    act = jnp.maximum(h2, 0.0)
    out_ref[...] = (
        jnp.dot(act, wlin_ref[...], preferred_element_type=jnp.float32)
        + blin_ref[...]
    ).astype(out_ref.dtype)


def prnn_forward(x, params, hidden_size, output_size):
    """x: (B, T, I) batch_first, like the PyTorch module."""
    B, T, I = x.shape
    H, O = hidden_size, output_size
    O_pad = ((O + 127) // 128) * 128  # lane-dense output store; sliced below

    x_tm = jnp.transpose(x, (1, 0, 2))  # (T, B, I) time-major

    # Fused + pre-transposed weights: gates = [x_t, h_prev] @ W, row-major.
    w0 = jnp.concatenate(
        [params["weight_ih_l0"].T, params["weight_hh_l0"].T], axis=0)  # (I+H, 4H)
    w1 = jnp.concatenate(
        [params["weight_ih_l1"].T, params["weight_hh_l1"].T], axis=0)  # (2H, 4H)
    b0 = (params["bias_ih_l0"] + params["bias_hh_l0"]).reshape(1, 4 * H)
    b1 = (params["bias_ih_l1"] + params["bias_hh_l1"]).reshape(1, 4 * H)

    wlin = jnp.zeros((H, O_pad), jnp.float32).at[:, :O].set(params["linear_w"].T)
    blin = jnp.zeros((1, O_pad), jnp.float32).at[:, :O].set(
        params["linear_b"].reshape(1, O))

    full = lambda shape: pl.BlockSpec(shape, lambda i: (0,) * len(shape))

    out = pl.pallas_call(
        functools.partial(prnn_kernel, seq_len=T, hidden=H, batch=B),
        out_shape=jax.ShapeDtypeStruct((B, O_pad), jnp.float32),
        grid=(1,),  # single invocation: recurrence handled by the in-kernel loop
        in_specs=[
            full((T, B, I)),
            full((I + H, 4 * H)),
            full((1, 4 * H)),
            full((2 * H, 4 * H)),
            full((1, 4 * H)),
            full((H, O_pad)),
            full((1, O_pad)),
        ],
        out_specs=full((B, O_pad)),
        compiler_params=pltpu.CompilerParams(
            dimension_semantics=("arbitrary",),
        ),
    )(x_tm, w0, b0, w1, b1, wlin, blin)
    return out[:, :O]


def prnn_reference(x, params, hidden_size, output_size):
    """Pure-JAX reference matching torch.nn.LSTM (batch_first) + ReLU + Linear."""
    B, T, I = x.shape
    H = hidden_size

    def cell(x_t, h, c, wih, whh, bih, bhh):
        gates = x_t @ wih.T + h @ whh.T + bih + bhh
        i = jax.nn.sigmoid(gates[:, 0 * H:1 * H])
        f = jax.nn.sigmoid(gates[:, 1 * H:2 * H])
        g = jnp.tanh(gates[:, 2 * H:3 * H])
        o = jax.nn.sigmoid(gates[:, 3 * H:4 * H])
        c_new = f * c + i * g
        h_new = o * jnp.tanh(c_new)
        return h_new, c_new

    h1 = jnp.zeros((B, H), jnp.float32)
    c1 = jnp.zeros((B, H), jnp.float32)
    h2 = jnp.zeros((B, H), jnp.float32)
    c2 = jnp.zeros((B, H), jnp.float32)
    for t in range(T):
        h1, c1 = cell(x[:, t, :], h1, c1,
                      params["weight_ih_l0"], params["weight_hh_l0"],
                      params["bias_ih_l0"], params["bias_hh_l0"])
        h2, c2 = cell(h1, h2, c2,
                      params["weight_ih_l1"], params["weight_hh_l1"],
                      params["bias_ih_l1"], params["bias_hh_l1"])
    act = jnp.maximum(h2, 0.0)
    return act @ params["linear_w"].T + params["linear_b"]


def init_params(key, input_size, hidden_size, output_size):
    H, I, O = hidden_size, input_size, output_size
    bound = 1.0 / jnp.sqrt(H)
    names_shapes = [
        ("weight_ih_l0", (4 * H, I)),
        ("weight_hh_l0", (4 * H, H)),
        ("bias_ih_l0", (4 * H,)),
        ("bias_hh_l0", (4 * H,)),
        ("weight_ih_l1", (4 * H, H)),
        ("weight_hh_l1", (4 * H, H)),
        ("bias_ih_l1", (4 * H,)),
        ("bias_hh_l1", (4 * H,)),
        ("linear_w", (O, H)),
        ("linear_b", (O,)),
    ]
    params = {}
    keys = jax.random.split(key, len(names_shapes))
    for k, (name, shape) in zip(keys, names_shapes):
        params[name] = jax.random.uniform(
            k, shape, jnp.float32, minval=-bound, maxval=bound)
    return params


if __name__ == "__main__":
    # Small shapes consistent with the module's forward: x is (B, T, input_size).
    B, T = 2, 8
    INPUT_SIZE, HIDDEN_SIZE, OUTPUT_SIZE = 16, 32, 3

    key = jax.random.PRNGKey(0)
    kx, kp = jax.random.split(key)
    x = jax.random.normal(kx, (B, T, INPUT_SIZE), jnp.float32)
    params = init_params(kp, INPUT_SIZE, HIDDEN_SIZE, OUTPUT_SIZE)

    out = prnn_forward(x, params, HIDDEN_SIZE, OUTPUT_SIZE)
    out = jax.block_until_ready(out)

    ref = prnn_reference(x, params, HIDDEN_SIZE, OUTPUT_SIZE)
    assert out.shape == (B, OUTPUT_SIZE)
    assert jnp.allclose(out, ref, atol=1e-5, rtol=1e-5), (out, ref)

    print("KERNEL_OK")
</pallas_src>

<mosaic_0001>
module attributes {stable_mosaic.version = 11 : i64} {
  func.func @prnn_kernel(%arg0: i32, %arg1: memref<8x2x16xf32, #tpu.memory_space<vmem>>, %arg2: memref<48x128xf32, #tpu.memory_space<vmem>>, %arg3: memref<1x128xf32, #tpu.memory_space<vmem>>, %arg4: memref<64x128xf32, #tpu.memory_space<vmem>>, %arg5: memref<1x128xf32, #tpu.memory_space<vmem>>, %arg6: memref<32x128xf32, #tpu.memory_space<vmem>>, %arg7: memref<1x128xf32, #tpu.memory_space<vmem>>, %arg8: memref<2x128xf32, #tpu.memory_space<vmem>>) attributes {dimension_semantics = [#tpu.dimension_semantics<arbitrary>], iteration_bounds = array<i64: 1>, scalar_prefetch = 0 : i64, scratch_operands = 0 : i64, tpu.core_type = #tpu.core_type<tc>, window_params = [{pipeline_mode = #tpu.pipeline_mode<synchronous>, transform_indices = @transform_0, window_bounds = array<i64: 8, 2, 16>}, {pipeline_mode = #tpu.pipeline_mode<synchronous>, transform_indices = @transform_1, window_bounds = array<i64: 48, 128>}, {pipeline_mode = #tpu.pipeline_mode<synchronous>, transform_indices = @transform_2, window_bounds = array<i64: 1, 128>}, {pipeline_mode = #tpu.pipeline_mode<synchronous>, transform_indices = @transform_3, window_bounds = array<i64: 64, 128>}, {pipeline_mode = #tpu.pipeline_mode<synchronous>, transform_indices = @transform_4, window_bounds = array<i64: 1, 128>}, {pipeline_mode = #tpu.pipeline_mode<synchronous>, transform_indices = @transform_5, window_bounds = array<i64: 32, 128>}, {pipeline_mode = #tpu.pipeline_mode<synchronous>, transform_indices = @transform_6, window_bounds = array<i64: 1, 128>}, {pipeline_mode = #tpu.pipeline_mode<synchronous>, transform_indices = @transform_7, window_bounds = array<i64: 2, 128>}]} {
    %c0 = arith.constant 0 : index
    %c0_0 = arith.constant 0 : index
    %0 = vector.load %arg2[%c0, %c0_0] : memref<48x128xf32, #tpu.memory_space<vmem>>, vector<48x128xf32>
    %c0_1 = arith.constant 0 : index
    %c0_2 = arith.constant 0 : index
    %1 = vector.load %arg4[%c0_1, %c0_2] : memref<64x128xf32, #tpu.memory_space<vmem>>, vector<64x128xf32>
    %c0_3 = arith.constant 0 : index
    %c0_4 = arith.constant 0 : index
    %2 = vector.load %arg3[%c0_3, %c0_4] : memref<1x128xf32, #tpu.memory_space<vmem>>, vector<1x128xf32>
    %3 = vector.shape_cast %2 : vector<1x128xf32> to vector<1x128xf32>
    %4 = vector.broadcast %3 : vector<1x128xf32> to vector<2x128xf32>
    %c0_5 = arith.constant 0 : index
    %c0_6 = arith.constant 0 : index
    %5 = vector.load %arg5[%c0_5, %c0_6] : memref<1x128xf32, #tpu.memory_space<vmem>>, vector<1x128xf32>
    %6 = vector.shape_cast %5 : vector<1x128xf32> to vector<1x128xf32>
    %7 = vector.broadcast %6 : vector<1x128xf32> to vector<2x128xf32>
    %cst = arith.constant 0.000000e+00 : f32
    %8 = vector.broadcast %cst : f32 to vector<2x32xf32>
    %c0_i32 = arith.constant 0 : i32
    %9 = arith.index_cast %c0_i32 : i32 to index
    %c0_7 = arith.constant 0 : index
    %c0_8 = arith.constant 0 : index
    %10 = vector.load %arg1[%9, %c0_7, %c0_8] : memref<8x2x16xf32, #tpu.memory_space<vmem>>, vector<1x2x16xf32>
    %11 = vector.shape_cast %10 : vector<1x2x16xf32> to vector<2x16xf32>
    %12 = tpu.concatenate %11, %8 in 1 : vector<2x16xf32>, vector<2x32xf32> -> vector<2x48xf32>
    %cst_9 = arith.constant dense<0.000000e+00> : vector<2x128xf32>
    %13 = tpu.matmul %12, %0, %cst_9 {dimension_numbers = #tpu.dot_dimension_numbers<[1], [0], [0], [1], [0, 0, 1, 1], [], []>} : vector<2x48xf32>, vector<48x128xf32>, vector<2x128xf32> -> vector<2x128xf32>
    %14 = arith.addf %13, %4 : vector<2x128xf32>
    %15 = vector.extract_strided_slice %14 {offsets = [0, 0], sizes = [2, 32], strides = [1, 1]} : vector<2x128xf32> to vector<2x32xf32>
    %16 = arith.negf %15 : vector<2x32xf32>
    %17 = math.exp %16 : vector<2x32xf32>
    %cst_10 = arith.constant 1.000000e+00 : f32
    %18 = vector.broadcast %cst_10 : f32 to vector<2x32xf32>
    %19 = arith.addf %18, %17 : vector<2x32xf32>
    %20 = arith.divf %18, %19 : vector<2x32xf32>
    %21 = vector.extract_strided_slice %14 {offsets = [0, 32], sizes = [2, 32], strides = [1, 1]} : vector<2x128xf32> to vector<2x32xf32>
    %22 = arith.negf %21 : vector<2x32xf32>
    %23 = math.exp %22 : vector<2x32xf32>
    %cst_11 = arith.constant 1.000000e+00 : f32
    %24 = vector.broadcast %cst_11 : f32 to vector<2x32xf32>
    %25 = arith.addf %24, %23 : vector<2x32xf32>
    %26 = arith.divf %24, %25 : vector<2x32xf32>
    %27 = vector.extract_strided_slice %14 {offsets = [0, 64], sizes = [2, 32], strides = [1, 1]} : vector<2x128xf32> to vector<2x32xf32>
    %28 = math.tanh %27 : vector<2x32xf32>
    %29 = vector.extract_strided_slice %14 {offsets = [0, 96], sizes = [2, 32], strides = [1, 1]} : vector<2x128xf32> to vector<2x32xf32>
    %30 = arith.negf %29 : vector<2x32xf32>
    %31 = math.exp %30 : vector<2x32xf32>
    %cst_12 = arith.constant 1.000000e+00 : f32
    %32 = vector.broadcast %cst_12 : f32 to vector<2x32xf32>
    %33 = arith.addf %32, %31 : vector<2x32xf32>
    %34 = arith.divf %32, %33 : vector<2x32xf32>
    %35 = arith.mulf %26, %8 : vector<2x32xf32>
    %36 = arith.mulf %20, %28 : vector<2x32xf32>
    %37 = arith.addf %35, %36 : vector<2x32xf32>
    %38 = math.tanh %37 : vector<2x32xf32>
    %39 = arith.mulf %34, %38 : vector<2x32xf32>
    %40 = tpu.concatenate %39, %8 in 1 : vector<2x32xf32>, vector<2x32xf32> -> vector<2x64xf32>
    %cst_13 = arith.constant dense<0.000000e+00> : vector<2x128xf32>
    %41 = tpu.matmul %40, %1, %cst_13 {dimension_numbers = #tpu.dot_dimension_numbers<[1], [0], [0], [1], [0, 0, 1, 1], [], []>} : vector<2x64xf32>, vector<64x128xf32>, vector<2x128xf32> -> vector<2x128xf32>
    %42 = arith.addf %41, %7 : vector<2x128xf32>
    %43 = vector.extract_strided_slice %42 {offsets = [0, 0], sizes = [2, 32], strides = [1, 1]} : vector<2x128xf32> to vector<2x32xf32>
    %44 = arith.negf %43 : vector<2x32xf32>
    %45 = math.exp %44 : vector<2x32xf32>
    %cst_14 = arith.constant 1.000000e+00 : f32
    %46 = vector.broadcast %cst_14 : f32 to vector<2x32xf32>
    %47 = arith.addf %46, %45 : vector<2x32xf32>
    %48 = arith.divf %46, %47 : vector<2x32xf32>
    %49 = vector.extract_strided_slice %42 {offsets = [0, 32], sizes = [2, 32], strides = [1, 1]} : vector<2x128xf32> to vector<2x32xf32>
    %50 = arith.negf %49 : vector<2x32xf32>
    %51 = math.exp %50 : vector<2x32xf32>
    %cst_15 = arith.constant 1.000000e+00 : f32
    %52 = vector.broadcast %cst_15 : f32 to vector<2x32xf32>
    %53 = arith.addf %52, %51 : vector<2x32xf32>
    %54 = arith.divf %52, %53 : vector<2x32xf32>
    %55 = vector.extract_strided_slice %42 {offsets = [0, 64], sizes = [2, 32], strides = [1, 1]} : vector<2x128xf32> to vector<2x32xf32>
    %56 = math.tanh %55 : vector<2x32xf32>
    %57 = vector.extract_strided_slice %42 {offsets = [0, 96], sizes = [2, 32], strides = [1, 1]} : vector<2x128xf32> to vector<2x32xf32>
    %58 = arith.negf %57 : vector<2x32xf32>
    %59 = math.exp %58 : vector<2x32xf32>
    %cst_16 = arith.constant 1.000000e+00 : f32
    %60 = vector.broadcast %cst_16 : f32 to vector<2x32xf32>
    %61 = arith.addf %60, %59 : vector<2x32xf32>
    %62 = arith.divf %60, %61 : vector<2x32xf32>
    %63 = arith.mulf %54, %8 : vector<2x32xf32>
    %64 = arith.mulf %48, %56 : vector<2x32xf32>
    %65 = arith.addf %63, %64 : vector<2x32xf32>
    %66 = math.tanh %65 : vector<2x32xf32>
    %67 = arith.mulf %62, %66 : vector<2x32xf32>
    %c1_i32 = arith.constant 1 : i32
    %68 = arith.index_cast %c1_i32 : i32 to index
    %c0_17 = arith.constant 0 : index
    %c0_18 = arith.constant 0 : index
    %69 = vector.load %arg1[%68, %c0_17, %c0_18] : memref<8x2x16xf32, #tpu.memory_space<vmem>>, vector<1x2x16xf32>
    %70 = vector.shape_cast %69 : vector<1x2x16xf32> to vector<2x16xf32>
    %71 = tpu.concatenate %70, %39 in 1 : vector<2x16xf32>, vector<2x32xf32> -> vector<2x48xf32>
    %cst_19 = arith.constant dense<0.000000e+00> : vector<2x128xf32>
    %72 = tpu.matmul %71, %0, %cst_19 {dimension_numbers = #tpu.dot_dimension_numbers<[1], [0], [0], [1], [0, 0, 1, 1], [], []>} : vector<2x48xf32>, vector<48x128xf32>, vector<2x128xf32> -> vector<2x128xf32>
    %73 = arith.addf %72, %4 : vector<2x128xf32>
    %74 = vector.extract_strided_slice %73 {offsets = [0, 0], sizes = [2, 32], strides = [1, 1]} : vector<2x128xf32> to vector<2x32xf32>
    %75 = arith.negf %74 : vector<2x32xf32>
    %76 = math.exp %75 : vector<2x32xf32>
    %cst_20 = arith.constant 1.000000e+00 : f32
    %77 = vector.broadcast %cst_20 : f32 to vector<2x32xf32>
    %78 = arith.addf %77, %76 : vector<2x32xf32>
    %79 = arith.divf %77, %78 : vector<2x32xf32>
    %80 = vector.extract_strided_slice %73 {offsets = [0, 32], sizes = [2, 32], strides = [1, 1]} : vector<2x128xf32> to vector<2x32xf32>
    %81 = arith.negf %80 : vector<2x32xf32>
    %82 = math.exp %81 : vector<2x32xf32>
    %cst_21 = arith.constant 1.000000e+00 : f32
    %83 = vector.broadcast %cst_21 : f32 to vector<2x32xf32>
    %84 = arith.addf %83, %82 : vector<2x32xf32>
    %85 = arith.divf %83, %84 : vector<2x32xf32>
    %86 = vector.extract_strided_slice %73 {offsets = [0, 64], sizes = [2, 32], strides = [1, 1]} : vector<2x128xf32> to vector<2x32xf32>
    %87 = math.tanh %86 : vector<2x32xf32>
    %88 = vector.extract_strided_slice %73 {offsets = [0, 96], sizes = [2, 32], strides = [1, 1]} : vector<2x128xf32> to vector<2x32xf32>
    %89 = arith.negf %88 : vector<2x32xf32>
    %90 = math.exp %89 : vector<2x32xf32>
    %cst_22 = arith.constant 1.000000e+00 : f32
    %91 = vector.broadcast %cst_22 : f32 to vector<2x32xf32>
    %92 = arith.addf %91, %90 : vector<2x32xf32>
    %93 = arith.divf %91, %92 : vector<2x32xf32>
    %94 = arith.mulf %85, %37 : vector<2x32xf32>
    %95 = arith.mulf %79, %87 : vector<2x32xf32>
    %96 = arith.addf %94, %95 : vector<2x32xf32>
    %97 = math.tanh %96 : vector<2x32xf32>
    %98 = arith.mulf %93, %97 : vector<2x32xf32>
    %99 = tpu.concatenate %98, %67 in 1 : vector<2x32xf32>, vector<2x32xf32> -> vector<2x64xf32>
    %cst_23 = arith.constant dense<0.000000e+00> : vector<2x128xf32>
    %100 = tpu.matmul %99, %1, %cst_23 {dimension_numbers = #tpu.dot_dimension_numbers<[1], [0], [0], [1], [0, 0, 1, 1], [], []>} : vector<2x64xf32>, vector<64x128xf32>, vector<2x128xf32> -> vector<2x128xf32>
    %101 = arith.addf %100, %7 : vector<2x128xf32>
    %102 = vector.extract_strided_slice %101 {offsets = [0, 0], sizes = [2, 32], strides = [1, 1]} : vector<2x128xf32> to vector<2x32xf32>
    %103 = arith.negf %102 : vector<2x32xf32>
    %104 = math.exp %103 : vector<2x32xf32>
    %cst_24 = arith.constant 1.000000e+00 : f32
    %105 = vector.broadcast %cst_24 : f32 to vector<2x32xf32>
    %106 = arith.addf %105, %104 : vector<2x32xf32>
    %107 = arith.divf %105, %106 : vector<2x32xf32>
    %108 = vector.extract_strided_slice %101 {offsets = [0, 32], sizes = [2, 32], strides = [1, 1]} : vector<2x128xf32> to vector<2x32xf32>
    %109 = arith.negf %108 : vector<2x32xf32>
    %110 = math.exp %109 : vector<2x32xf32>
    %cst_25 = arith.constant 1.000000e+00 : f32
    %111 = vector.broadcast %cst_25 : f32 to vector<2x32xf32>
    %112 = arith.addf %111, %110 : vector<2x32xf32>
    %113 = arith.divf %111, %112 : vector<2x32xf32>
    %114 = vector.extract_strided_slice %101 {offsets = [0, 64], sizes = [2, 32], strides = [1, 1]} : vector<2x128xf32> to vector<2x32xf32>
    %115 = math.tanh %114 : vector<2x32xf32>
    %116 = vector.extract_strided_slice %101 {offsets = [0, 96], sizes = [2, 32], strides = [1, 1]} : vector<2x128xf32> to vector<2x32xf32>
    %117 = arith.negf %116 : vector<2x32xf32>
    %118 = math.exp %117 : vector<2x32xf32>
    %cst_26 = arith.constant 1.000000e+00 : f32
    %119 = vector.broadcast %cst_26 : f32 to vector<2x32xf32>
    %120 = arith.addf %119, %118 : vector<2x32xf32>
    %121 = arith.divf %119, %120 : vector<2x32xf32>
    %122 = arith.mulf %113, %65 : vector<2x32xf32>
    %123 = arith.mulf %107, %115 : vector<2x32xf32>
    %124 = arith.addf %122, %123 : vector<2x32xf32>
    %125 = math.tanh %124 : vector<2x32xf32>
    %126 = arith.mulf %121, %125 : vector<2x32xf32>
    %c2_i32 = arith.constant 2 : i32
    %127 = arith.index_cast %c2_i32 : i32 to index
    %c0_27 = arith.constant 0 : index
    %c0_28 = arith.constant 0 : index
    %128 = vector.load %arg1[%127, %c0_27, %c0_28] : memref<8x2x16xf32, #tpu.memory_space<vmem>>, vector<1x2x16xf32>
    %129 = vector.shape_cast %128 : vector<1x2x16xf32> to vector<2x16xf32>
    %130 = tpu.concatenate %129, %98 in 1 : vector<2x16xf32>, vector<2x32xf32> -> vector<2x48xf32>
    %cst_29 = arith.constant dense<0.000000e+00> : vector<2x128xf32>
    %131 = tpu.matmul %130, %0, %cst_29 {dimension_numbers = #tpu.dot_dimension_numbers<[1], [0], [0], [1], [0, 0, 1, 1], [], []>} : vector<2x48xf32>, vector<48x128xf32>, vector<2x128xf32> -> vector<2x128xf32>
    %132 = arith.addf %131, %4 : vector<2x128xf32>
    %133 = vector.extract_strided_slice %132 {offsets = [0, 0], sizes = [2, 32], strides = [1, 1]} : vector<2x128xf32> to vector<2x32xf32>
    %134 = arith.negf %133 : vector<2x32xf32>
    %135 = math.exp %134 : vector<2x32xf32>
    %cst_30 = arith.constant 1.000000e+00 : f32
    %136 = vector.broadcast %cst_30 : f32 to vector<2x32xf32>
    %137 = arith.addf %136, %135 : vector<2x32xf32>
    %138 = arith.divf %136, %137 : vector<2x32xf32>
    %139 = vector.extract_strided_slice %132 {offsets = [0, 32], sizes = [2, 32], strides = [1, 1]} : vector<2x128xf32> to vector<2x32xf32>
    %140 = arith.negf %139 : vector<2x32xf32>
    %141 = math.exp %140 : vector<2x32xf32>
    %cst_31 = arith.constant 1.000000e+00 : f32
    %142 = vector.broadcast %cst_31 : f32 to vector<2x32xf32>
    %143 = arith.addf %142, %141 : vector<2x32xf32>
    %144 = arith.divf %142, %143 : vector<2x32xf32>
    %145 = vector.extract_strided_slice %132 {offsets = [0, 64], sizes = [2, 32], strides = [1, 1]} : vector<2x128xf32> to vector<2x32xf32>
    %146 = math.tanh %145 : vector<2x32xf32>
    %147 = vector.extract_strided_slice %132 {offsets = [0, 96], sizes = [2, 32], strides = [1, 1]} : vector<2x128xf32> to vector<2x32xf32>
    %148 = arith.negf %147 : vector<2x32xf32>
    %149 = math.exp %148 : vector<2x32xf32>
    %cst_32 = arith.constant 1.000000e+00 : f32
    %150 = vector.broadcast %cst_32 : f32 to vector<2x32xf32>
    %151 = arith.addf %150, %149 : vector<2x32xf32>
    %152 = arith.divf %150, %151 : vector<2x32xf32>
    %153 = arith.mulf %144, %96 : vector<2x32xf32>
    %154 = arith.mulf %138, %146 : vector<2x32xf32>
    %155 = arith.addf %153, %154 : vector<2x32xf32>
    %156 = math.tanh %155 : vector<2x32xf32>
    %157 = arith.mulf %152, %156 : vector<2x32xf32>
    %158 = tpu.concatenate %157, %126 in 1 : vector<2x32xf32>, vector<2x32xf32> -> vector<2x64xf32>
    %cst_33 = arith.constant dense<0.000000e+00> : vector<2x128xf32>
    %159 = tpu.matmul %158, %1, %cst_33 {dimension_numbers = #tpu.dot_dimension_numbers<[1], [0], [0], [1], [0, 0, 1, 1], [], []>} : vector<2x64xf32>, vector<64x128xf32>, vector<2x128xf32> -> vector<2x128xf32>
    %160 = arith.addf %159, %7 : vector<2x128xf32>
    %161 = vector.extract_strided_slice %160 {offsets = [0, 0], sizes = [2, 32], strides = [1, 1]} : vector<2x128xf32> to vector<2x32xf32>
    %162 = arith.negf %161 : vector<2x32xf32>
    %163 = math.exp %162 : vector<2x32xf32>
    %cst_34 = arith.constant 1.000000e+00 : f32
    %164 = vector.broadcast %cst_34 : f32 to vector<2x32xf32>
    %165 = arith.addf %164, %163 : vector<2x32xf32>
    %166 = arith.divf %164, %165 : vector<2x32xf32>
    %167 = vector.extract_strided_slice %160 {offsets = [0, 32], sizes = [2, 32], strides = [1, 1]} : vector<2x128xf32> to vector<2x32xf32>
    %168 = arith.negf %167 : vector<2x32xf32>
    %169 = math.exp %168 : vector<2x32xf32>
    %cst_35 = arith.constant 1.000000e+00 : f32
    %170 = vector.broadcast %cst_35 : f32 to vector<2x32xf32>
    %171 = arith.addf %170, %169 : vector<2x32xf32>
    %172 = arith.divf %170, %171 : vector<2x32xf32>
    %173 = vector.extract_strided_slice %160 {offsets = [0, 64], sizes = [2, 32], strides = [1, 1]} : vector<2x128xf32> to vector<2x32xf32>
    %174 = math.tanh %173 : vector<2x32xf32>
    %175 = vector.extract_strided_slice %160 {offsets = [0, 96], sizes = [2, 32], strides = [1, 1]} : vector<2x128xf32> to vector<2x32xf32>
    %176 = arith.negf %175 : vector<2x32xf32>
    %177 = math.exp %176 : vector<2x32xf32>
    %cst_36 = arith.constant 1.000000e+00 : f32
    %178 = vector.broadcast %cst_36 : f32 to vector<2x32xf32>
    %179 = arith.addf %178, %177 : vector<2x32xf32>
    %180 = arith.divf %178, %179 : vector<2x32xf32>
    %181 = arith.mulf %172, %124 : vector<2x32xf32>
    %182 = arith.mulf %166, %174 : vector<2x32xf32>
    %183 = arith.addf %181, %182 : vector<2x32xf32>
    %184 = math.tanh %183 : vector<2x32xf32>
    %185 = arith.mulf %180, %184 : vector<2x32xf32>
    %c3_i32 = arith.constant 3 : i32
    %186 = arith.index_cast %c3_i32 : i32 to index
    %c0_37 = arith.constant 0 : index
    %c0_38 = arith.constant 0 : index
    %187 = vector.load %arg1[%186, %c0_37, %c0_38] : memref<8x2x16xf32, #tpu.memory_space<vmem>>, vector<1x2x16xf32>
    %188 = vector.shape_cast %187 : vector<1x2x16xf32> to vector<2x16xf32>
    %189 = tpu.concatenate %188, %157 in 1 : vector<2x16xf32>, vector<2x32xf32> -> vector<2x48xf32>
    %cst_39 = arith.constant dense<0.000000e+00> : vector<2x128xf32>
    %190 = tpu.matmul %189, %0, %cst_39 {dimension_numbers = #tpu.dot_dimension_numbers<[1], [0], [0], [1], [0, 0, 1, 1], [], []>} : vector<2x48xf32>, vector<48x128xf32>, vector<2x128xf32> -> vector<2x128xf32>
    %191 = arith.addf %190, %4 : vector<2x128xf32>
    %192 = vector.extract_strided_slice %191 {offsets = [0, 0], sizes = [2, 32], strides = [1, 1]} : vector<2x128xf32> to vector<2x32xf32>
    %193 = arith.negf %192 : vector<2x32xf32>
    %194 = math.exp %193 : vector<2x32xf32>
    %cst_40 = arith.constant 1.000000e+00 : f32
    %195 = vector.broadcast %cst_40 : f32 to vector<2x32xf32>
    %196 = arith.addf %195, %194 : vector<2x32xf32>
    %197 = arith.divf %195, %196 : vector<2x32xf32>
    %198 = vector.extract_strided_slice %191 {offsets = [0, 32], sizes = [2, 32], strides = [1, 1]} : vector<2x128xf32> to vector<2x32xf32>
    %199 = arith.negf %198 : vector<2x32xf32>
    %200 = math.exp %199 : vector<2x32xf32>
    %cst_41 = arith.constant 1.000000e+00 : f32
    %201 = vector.broadcast %cst_41 : f32 to vector<2x32xf32>
    %202 = arith.addf %201, %200 : vector<2x32xf32>
    %203 = arith.divf %201, %202 : vector<2x32xf32>
    %204 = vector.extract_strided_slice %191 {offsets = [0, 64], sizes = [2, 32], strides = [1, 1]} : vector<2x128xf32> to vector<2x32xf32>
    %205 = math.tanh %204 : vector<2x32xf32>
    %206 = vector.extract_strided_slice %191 {offsets = [0, 96], sizes = [2, 32], strides = [1, 1]} : vector<2x128xf32> to vector<2x32xf32>
    %207 = arith.negf %206 : vector<2x32xf32>
    %208 = math.exp %207 : vector<2x32xf32>
    %cst_42 = arith.constant 1.000000e+00 : f32
    %209 = vector.broadcast %cst_42 : f32 to vector<2x32xf32>
    %210 = arith.addf %209, %208 : vector<2x32xf32>
    %211 = arith.divf %209, %210 : vector<2x32xf32>
    %212 = arith.mulf %203, %155 : vector<2x32xf32>
    %213 = arith.mulf %197, %205 : vector<2x32xf32>
    %214 = arith.addf %212, %213 : vector<2x32xf32>
    %215 = math.tanh %214 : vector<2x32xf32>
    %216 = arith.mulf %211, %215 : vector<2x32xf32>
    %217 = tpu.concatenate %216, %185 in 1 : vector<2x32xf32>, vector<2x32xf32> -> vector<2x64xf32>
    %cst_43 = arith.constant dense<0.000000e+00> : vector<2x128xf32>
    %218 = tpu.matmul %217, %1, %cst_43 {dimension_numbers = #tpu.dot_dimension_numbers<[1], [0], [0], [1], [0, 0, 1, 1], [], []>} : vector<2x64xf32>, vector<64x128xf32>, vector<2x128xf32> -> vector<2x128xf32>
    %219 = arith.addf %218, %7 : vector<2x128xf32>
    %220 = vector.extract_strided_slice %219 {offsets = [0, 0], sizes = [2, 32], strides = [1, 1]} : vector<2x128xf32> to vector<2x32xf32>
    %221 = arith.negf %220 : vector<2x32xf32>
    %222 = math.exp %221 : vector<2x32xf32>
    %cst_44 = arith.constant 1.000000e+00 : f32
    %223 = vector.broadcast %cst_44 : f32 to vector<2x32xf32>
    %224 = arith.addf %223, %222 : vector<2x32xf32>
    %225 = arith.divf %223, %224 : vector<2x32xf32>
    %226 = vector.extract_strided_slice %219 {offsets = [0, 32], sizes = [2, 32], strides = [1, 1]} : vector<2x128xf32> to vector<2x32xf32>
    %227 = arith.negf %226 : vector<2x32xf32>
    %228 = math.exp %227 : vector<2x32xf32>
    %cst_45 = arith.constant 1.000000e+00 : f32
    %229 = vector.broadcast %cst_45 : f32 to vector<2x32xf32>
    %230 = arith.addf %229, %228 : vector<2x32xf32>
    %231 = arith.divf %229, %230 : vector<2x32xf32>
    %232 = vector.extract_strided_slice %219 {offsets = [0, 64], sizes = [2, 32], strides = [1, 1]} : vector<2x128xf32> to vector<2x32xf32>
    %233 = math.tanh %232 : vector<2x32xf32>
    %234 = vector.extract_strided_slice %219 {offsets = [0, 96], sizes = [2, 32], strides = [1, 1]} : vector<2x128xf32> to vector<2x32xf32>
    %235 = arith.negf %234 : vector<2x32xf32>
    %236 = math.exp %235 : vector<2x32xf32>
    %cst_46 = arith.constant 1.000000e+00 : f32
    %237 = vector.broadcast %cst_46 : f32 to vector<2x32xf32>
    %238 = arith.addf %237, %236 : vector<2x32xf32>
    %239 = arith.divf %237, %238 : vector<2x32xf32>
    %240 = arith.mulf %231, %183 : vector<2x32xf32>
    %241 = arith.mulf %225, %233 : vector<2x32xf32>
    %242 = arith.addf %240, %241 : vector<2x32xf32>
    %243 = math.tanh %242 : vector<2x32xf32>
    %244 = arith.mulf %239, %243 : vector<2x32xf32>
    %c4_i32 = arith.constant 4 : i32
    %245 = arith.index_cast %c4_i32 : i32 to index
    %c0_47 = arith.constant 0 : index
    %c0_48 = arith.constant 0 : index
    %246 = vector.load %arg1[%245, %c0_47, %c0_48] : memref<8x2x16xf32, #tpu.memory_space<vmem>>, vector<1x2x16xf32>
    %247 = vector.shape_cast %246 : vector<1x2x16xf32> to vector<2x16xf32>
    %248 = tpu.concatenate %247, %216 in 1 : vector<2x16xf32>, vector<2x32xf32> -> vector<2x48xf32>
    %cst_49 = arith.constant dense<0.000000e+00> : vector<2x128xf32>
    %249 = tpu.matmul %248, %0, %cst_49 {dimension_numbers = #tpu.dot_dimension_numbers<[1], [0], [0], [1], [0, 0, 1, 1], [], []>} : vector<2x48xf32>, vector<48x128xf32>, vector<2x128xf32> -> vector<2x128xf32>
    %250 = arith.addf %249, %4 : vector<2x128xf32>
    %251 = vector.extract_strided_slice %250 {offsets = [0, 0], sizes = [2, 32], strides = [1, 1]} : vector<2x128xf32> to vector<2x32xf32>
    %252 = arith.negf %251 : vector<2x32xf32>
    %253 = math.exp %252 : vector<2x32xf32>
    %cst_50 = arith.constant 1.000000e+00 : f32
    %254 = vector.broadcast %cst_50 : f32 to vector<2x32xf32>
    %255 = arith.addf %254, %253 : vector<2x32xf32>
    %256 = arith.divf %254, %255 : vector<2x32xf32>
    %257 = vector.extract_strided_slice %250 {offsets = [0, 32], sizes = [2, 32], strides = [1, 1]} : vector<2x128xf32> to vector<2x32xf32>
    %258 = arith.negf %257 : vector<2x32xf32>
    %259 = math.exp %258 : vector<2x32xf32>
    %cst_51 = arith.constant 1.000000e+00 : f32
    %260 = vector.broadcast %cst_51 : f32 to vector<2x32xf32>
    %261 = arith.addf %260, %259 : vector<2x32xf32>
    %262 = arith.divf %260, %261 : vector<2x32xf32>
    %263 = vector.extract_strided_slice %250 {offsets = [0, 64], sizes = [2, 32], strides = [1, 1]} : vector<2x128xf32> to vector<2x32xf32>
    %264 = math.tanh %263 : vector<2x32xf32>
    %265 = vector.extract_strided_slice %250 {offsets = [0, 96], sizes = [2, 32], strides = [1, 1]} : vector<2x128xf32> to vector<2x32xf32>
    %266 = arith.negf %265 : vector<2x32xf32>
    %267 = math.exp %266 : vector<2x32xf32>
    %cst_52 = arith.constant 1.000000e+00 : f32
    %268 = vector.broadcast %cst_52 : f32 to vector<2x32xf32>
    %269 = arith.addf %268, %267 : vector<2x32xf32>
    %270 = arith.divf %268, %269 : vector<2x32xf32>
    %271 = arith.mulf %262, %214 : vector<2x32xf32>
    %272 = arith.mulf %256, %264 : vector<2x32xf32>
    %273 = arith.addf %271, %272 : vector<2x32xf32>
    %274 = math.tanh %273 : vector<2x32xf32>
    %275 = arith.mulf %270, %274 : vector<2x32xf32>
    %276 = tpu.concatenate %275, %244 in 1 : vector<2x32xf32>, vector<2x32xf32> -> vector<2x64xf32>
    %cst_53 = arith.constant dense<0.000000e+00> : vector<2x128xf32>
    %277 = tpu.matmul %276, %1, %cst_53 {dimension_numbers = #tpu.dot_dimension_numbers<[1], [0], [0], [1], [0, 0, 1, 1], [], []>} : vector<2x64xf32>, vector<64x128xf32>, vector<2x128xf32> -> vector<2x128xf32>
    %278 = arith.addf %277, %7 : vector<2x128xf32>
    %279 = vector.extract_strided_slice %278 {offsets = [0, 0], sizes = [2, 32], strides = [1, 1]} : vector<2x128xf32> to vector<2x32xf32>
    %280 = arith.negf %279 : vector<2x32xf32>
    %281 = math.exp %280 : vector<2x32xf32>
    %cst_54 = arith.constant 1.000000e+00 : f32
    %282 = vector.broadcast %cst_54 : f32 to vector<2x32xf32>
    %283 = arith.addf %282, %281 : vector<2x32xf32>
    %284 = arith.divf %282, %283 : vector<2x32xf32>
    %285 = vector.extract_strided_slice %278 {offsets = [0, 32], sizes = [2, 32], strides = [1, 1]} : vector<2x128xf32> to vector<2x32xf32>
    %286 = arith.negf %285 : vector<2x32xf32>
    %287 = math.exp %286 : vector<2x32xf32>
    %cst_55 = arith.constant 1.000000e+00 : f32
    %288 = vector.broadcast %cst_55 : f32 to vector<2x32xf32>
    %289 = arith.addf %288, %287 : vector<2x32xf32>
    %290 = arith.divf %288, %289 : vector<2x32xf32>
    %291 = vector.extract_strided_slice %278 {offsets = [0, 64], sizes = [2, 32], strides = [1, 1]} : vector<2x128xf32> to vector<2x32xf32>
    %292 = math.tanh %291 : vector<2x32xf32>
    %293 = vector.extract_strided_slice %278 {offsets = [0, 96], sizes = [2, 32], strides = [1, 1]} : vector<2x128xf32> to vector<2x32xf32>
    %294 = arith.negf %293 : vector<2x32xf32>
    %295 = math.exp %294 : vector<2x32xf32>
    %cst_56 = arith.constant 1.000000e+00 : f32
    %296 = vector.broadcast %cst_56 : f32 to vector<2x32xf32>
    %297 = arith.addf %296, %295 : vector<2x32xf32>
    %298 = arith.divf %296, %297 : vector<2x32xf32>
    %299 = arith.mulf %290, %242 : vector<2x32xf32>
    %300 = arith.mulf %284, %292 : vector<2x32xf32>
    %301 = arith.addf %299, %300 : vector<2x32xf32>
    %302 = math.tanh %301 : vector<2x32xf32>
    %303 = arith.mulf %298, %302 : vector<2x32xf32>
    %c5_i32 = arith.constant 5 : i32
    %304 = arith.index_cast %c5_i32 : i32 to index
    %c0_57 = arith.constant 0 : index
    %c0_58 = arith.constant 0 : index
    %305 = vector.load %arg1[%304, %c0_57, %c0_58] : memref<8x2x16xf32, #tpu.memory_space<vmem>>, vector<1x2x16xf32>
    %306 = vector.shape_cast %305 : vector<1x2x16xf32> to vector<2x16xf32>
    %307 = tpu.concatenate %306, %275 in 1 : vector<2x16xf32>, vector<2x32xf32> -> vector<2x48xf32>
    %cst_59 = arith.constant dense<0.000000e+00> : vector<2x128xf32>
    %308 = tpu.matmul %307, %0, %cst_59 {dimension_numbers = #tpu.dot_dimension_numbers<[1], [0], [0], [1], [0, 0, 1, 1], [], []>} : vector<2x48xf32>, vector<48x128xf32>, vector<2x128xf32> -> vector<2x128xf32>
    %309 = arith.addf %308, %4 : vector<2x128xf32>
    %310 = vector.extract_strided_slice %309 {offsets = [0, 0], sizes = [2, 32], strides = [1, 1]} : vector<2x128xf32> to vector<2x32xf32>
    %311 = arith.negf %310 : vector<2x32xf32>
    %312 = math.exp %311 : vector<2x32xf32>
    %cst_60 = arith.constant 1.000000e+00 : f32
    %313 = vector.broadcast %cst_60 : f32 to vector<2x32xf32>
    %314 = arith.addf %313, %312 : vector<2x32xf32>
    %315 = arith.divf %313, %314 : vector<2x32xf32>
    %316 = vector.extract_strided_slice %309 {offsets = [0, 32], sizes = [2, 32], strides = [1, 1]} : vector<2x128xf32> to vector<2x32xf32>
    %317 = arith.negf %316 : vector<2x32xf32>
    %318 = math.exp %317 : vector<2x32xf32>
    %cst_61 = arith.constant 1.000000e+00 : f32
    %319 = vector.broadcast %cst_61 : f32 to vector<2x32xf32>
    %320 = arith.addf %319, %318 : vector<2x32xf32>
    %321 = arith.divf %319, %320 : vector<2x32xf32>
    %322 = vector.extract_strided_slice %309 {offsets = [0, 64], sizes = [2, 32], strides = [1, 1]} : vector<2x128xf32> to vector<2x32xf32>
    %323 = math.tanh %322 : vector<2x32xf32>
    %324 = vector.extract_strided_slice %309 {offsets = [0, 96], sizes = [2, 32], strides = [1, 1]} : vector<2x128xf32> to vector<2x32xf32>
    %325 = arith.negf %324 : vector<2x32xf32>
    %326 = math.exp %325 : vector<2x32xf32>
    %cst_62 = arith.constant 1.000000e+00 : f32
    %327 = vector.broadcast %cst_62 : f32 to vector<2x32xf32>
    %328 = arith.addf %327, %326 : vector<2x32xf32>
    %329 = arith.divf %327, %328 : vector<2x32xf32>
    %330 = arith.mulf %321, %273 : vector<2x32xf32>
    %331 = arith.mulf %315, %323 : vector<2x32xf32>
    %332 = arith.addf %330, %331 : vector<2x32xf32>
    %333 = math.tanh %332 : vector<2x32xf32>
    %334 = arith.mulf %329, %333 : vector<2x32xf32>
    %335 = tpu.concatenate %334, %303 in 1 : vector<2x32xf32>, vector<2x32xf32> -> vector<2x64xf32>
    %cst_63 = arith.constant dense<0.000000e+00> : vector<2x128xf32>
    %336 = tpu.matmul %335, %1, %cst_63 {dimension_numbers = #tpu.dot_dimension_numbers<[1], [0], [0], [1], [0, 0, 1, 1], [], []>} : vector<2x64xf32>, vector<64x128xf32>, vector<2x128xf32> -> vector<2x128xf32>
    %337 = arith.addf %336, %7 : vector<2x128xf32>
    %338 = vector.extract_strided_slice %337 {offsets = [0, 0], sizes = [2, 32], strides = [1, 1]} : vector<2x128xf32> to vector<2x32xf32>
    %339 = arith.negf %338 : vector<2x32xf32>
    %340 = math.exp %339 : vector<2x32xf32>
    %cst_64 = arith.constant 1.000000e+00 : f32
    %341 = vector.broadcast %cst_64 : f32 to vector<2x32xf32>
    %342 = arith.addf %341, %340 : vector<2x32xf32>
    %343 = arith.divf %341, %342 : vector<2x32xf32>
    %344 = vector.extract_strided_slice %337 {offsets = [0, 32], sizes = [2, 32], strides = [1, 1]} : vector<2x128xf32> to vector<2x32xf32>
    %345 = arith.negf %344 : vector<2x32xf32>
    %346 = math.exp %345 : vector<2x32xf32>
    %cst_65 = arith.constant 1.000000e+00 : f32
    %347 = vector.broadcast %cst_65 : f32 to vector<2x32xf32>
    %348 = arith.addf %347, %346 : vector<2x32xf32>
    %349 = arith.divf %347, %348 : vector<2x32xf32>
    %350 = vector.extract_strided_slice %337 {offsets = [0, 64], sizes = [2, 32], strides = [1, 1]} : vector<2x128xf32> to vector<2x32xf32>
    %351 = math.tanh %350 : vector<2x32xf32>
    %352 = vector.extract_strided_slice %337 {offsets = [0, 96], sizes = [2, 32], strides = [1, 1]} : vector<2x128xf32> to vector<2x32xf32>
    %353 = arith.negf %352 : vector<2x32xf32>
    %354 = math.exp %353 : vector<2x32xf32>
    %cst_66 = arith.constant 1.000000e+00 : f32
    %355 = vector.broadcast %cst_66 : f32 to vector<2x32xf32>
    %356 = arith.addf %355, %354 : vector<2x32xf32>
    %357 = arith.divf %355, %356 : vector<2x32xf32>
    %358 = arith.mulf %349, %301 : vector<2x32xf32>
    %359 = arith.mulf %343, %351 : vector<2x32xf32>
    %360 = arith.addf %358, %359 : vector<2x32xf32>
    %361 = math.tanh %360 : vector<2x32xf32>
    %362 = arith.mulf %357, %361 : vector<2x32xf32>
    %c6_i32 = arith.constant 6 : i32
    %363 = arith.index_cast %c6_i32 : i32 to index
    %c0_67 = arith.constant 0 : index
    %c0_68 = arith.constant 0 : index
    %364 = vector.load %arg1[%363, %c0_67, %c0_68] : memref<8x2x16xf32, #tpu.memory_space<vmem>>, vector<1x2x16xf32>
    %365 = vector.shape_cast %364 : vector<1x2x16xf32> to vector<2x16xf32>
    %366 = tpu.concatenate %365, %334 in 1 : vector<2x16xf32>, vector<2x32xf32> -> vector<2x48xf32>
    %cst_69 = arith.constant dense<0.000000e+00> : vector<2x128xf32>
    %367 = tpu.matmul %366, %0, %cst_69 {dimension_numbers = #tpu.dot_dimension_numbers<[1], [0], [0], [1], [0, 0, 1, 1], [], []>} : vector<2x48xf32>, vector<48x128xf32>, vector<2x128xf32> -> vector<2x128xf32>
    %368 = arith.addf %367, %4 : vector<2x128xf32>
    %369 = vector.extract_strided_slice %368 {offsets = [0, 0], sizes = [2, 32], strides = [1, 1]} : vector<2x128xf32> to vector<2x32xf32>
    %370 = arith.negf %369 : vector<2x32xf32>
    %371 = math.exp %370 : vector<2x32xf32>
    %cst_70 = arith.constant 1.000000e+00 : f32
    %372 = vector.broadcast %cst_70 : f32 to vector<2x32xf32>
    %373 = arith.addf %372, %371 : vector<2x32xf32>
    %374 = arith.divf %372, %373 : vector<2x32xf32>
    %375 = vector.extract_strided_slice %368 {offsets = [0, 32], sizes = [2, 32], strides = [1, 1]} : vector<2x128xf32> to vector<2x32xf32>
    %376 = arith.negf %375 : vector<2x32xf32>
    %377 = math.exp %376 : vector<2x32xf32>
    %cst_71 = arith.constant 1.000000e+00 : f32
    %378 = vector.broadcast %cst_71 : f32 to vector<2x32xf32>
    %379 = arith.addf %378, %377 : vector<2x32xf32>
    %380 = arith.divf %378, %379 : vector<2x32xf32>
    %381 = vector.extract_strided_slice %368 {offsets = [0, 64], sizes = [2, 32], strides = [1, 1]} : vector<2x128xf32> to vector<2x32xf32>
    %382 = math.tanh %381 : vector<2x32xf32>
    %383 = vector.extract_strided_slice %368 {offsets = [0, 96], sizes = [2, 32], strides = [1, 1]} : vector<2x128xf32> to vector<2x32xf32>
    %384 = arith.negf %383 : vector<2x32xf32>
    %385 = math.exp %384 : vector<2x32xf32>
    %cst_72 = arith.constant 1.000000e+00 : f32
    %386 = vector.broadcast %cst_72 : f32 to vector<2x32xf32>
    %387 = arith.addf %386, %385 : vector<2x32xf32>
    %388 = arith.divf %386, %387 : vector<2x32xf32>
    %389 = arith.mulf %380, %332 : vector<2x32xf32>
    %390 = arith.mulf %374, %382 : vector<2x32xf32>
    %391 = arith.addf %389, %390 : vector<2x32xf32>
    %392 = math.tanh %391 : vector<2x32xf32>
    %393 = arith.mulf %388, %392 : vector<2x32xf32>
    %394 = tpu.concatenate %393, %362 in 1 : vector<2x32xf32>, vector<2x32xf32> -> vector<2x64xf32>
    %cst_73 = arith.constant dense<0.000000e+00> : vector<2x128xf32>
    %395 = tpu.matmul %394, %1, %cst_73 {dimension_numbers = #tpu.dot_dimension_numbers<[1], [0], [0], [1], [0, 0, 1, 1], [], []>} : vector<2x64xf32>, vector<64x128xf32>, vector<2x128xf32> -> vector<2x128xf32>
    %396 = arith.addf %395, %7 : vector<2x128xf32>
    %397 = vector.extract_strided_slice %396 {offsets = [0, 0], sizes = [2, 32], strides = [1, 1]} : vector<2x128xf32> to vector<2x32xf32>
    %398 = arith.negf %397 : vector<2x32xf32>
    %399 = math.exp %398 : vector<2x32xf32>
    %cst_74 = arith.constant 1.000000e+00 : f32
    %400 = vector.broadcast %cst_74 : f32 to vector<2x32xf32>
    %401 = arith.addf %400, %399 : vector<2x32xf32>
    %402 = arith.divf %400, %401 : vector<2x32xf32>
    %403 = vector.extract_strided_slice %396 {offsets = [0, 32], sizes = [2, 32], strides = [1, 1]} : vector<2x128xf32> to vector<2x32xf32>
    %404 = arith.negf %403 : vector<2x32xf32>
    %405 = math.exp %404 : vector<2x32xf32>
    %cst_75 = arith.constant 1.000000e+00 : f32
    %406 = vector.broadcast %cst_75 : f32 to vector<2x32xf32>
    %407 = arith.addf %406, %405 : vector<2x32xf32>
    %408 = arith.divf %406, %407 : vector<2x32xf32>
    %409 = vector.extract_strided_slice %396 {offsets = [0, 64], sizes = [2, 32], strides = [1, 1]} : vector<2x128xf32> to vector<2x32xf32>
    %410 = math.tanh %409 : vector<2x32xf32>
    %411 = vector.extract_strided_slice %396 {offsets = [0, 96], sizes = [2, 32], strides = [1, 1]} : vector<2x128xf32> to vector<2x32xf32>
    %412 = arith.negf %411 : vector<2x32xf32>
    %413 = math.exp %412 : vector<2x32xf32>
    %cst_76 = arith.constant 1.000000e+00 : f32
    %414 = vector.broadcast %cst_76 : f32 to vector<2x32xf32>
    %415 = arith.addf %414, %413 : vector<2x32xf32>
    %416 = arith.divf %414, %415 : vector<2x32xf32>
    %417 = arith.mulf %408, %360 : vector<2x32xf32>
    %418 = arith.mulf %402, %410 : vector<2x32xf32>
    %419 = arith.addf %417, %418 : vector<2x32xf32>
    %420 = math.tanh %419 : vector<2x32xf32>
    %421 = arith.mulf %416, %420 : vector<2x32xf32>
    %c7_i32 = arith.constant 7 : i32
    %422 = arith.index_cast %c7_i32 : i32 to index
    %c0_77 = arith.constant 0 : index
    %c0_78 = arith.constant 0 : index
    %423 = vector.load %arg1[%422, %c0_77, %c0_78] : memref<8x2x16xf32, #tpu.memory_space<vmem>>, vector<1x2x16xf32>
    %424 = vector.shape_cast %423 : vector<1x2x16xf32> to vector<2x16xf32>
    %425 = tpu.concatenate %424, %393 in 1 : vector<2x16xf32>, vector<2x32xf32> -> vector<2x48xf32>
    %cst_79 = arith.constant dense<0.000000e+00> : vector<2x128xf32>
    %426 = tpu.matmul %425, %0, %cst_79 {dimension_numbers = #tpu.dot_dimension_numbers<[1], [0], [0], [1], [0, 0, 1, 1], [], []>} : vector<2x48xf32>, vector<48x128xf32>, vector<2x128xf32> -> vector<2x128xf32>
    %427 = arith.addf %426, %4 : vector<2x128xf32>
    %428 = vector.extract_strided_slice %427 {offsets = [0, 0], sizes = [2, 32], strides = [1, 1]} : vector<2x128xf32> to vector<2x32xf32>
    %429 = arith.negf %428 : vector<2x32xf32>
    %430 = math.exp %429 : vector<2x32xf32>
    %cst_80 = arith.constant 1.000000e+00 : f32
    %431 = vector.broadcast %cst_80 : f32 to vector<2x32xf32>
    %432 = arith.addf %431, %430 : vector<2x32xf32>
    %433 = arith.divf %431, %432 : vector<2x32xf32>
    %434 = vector.extract_strided_slice %427 {offsets = [0, 32], sizes = [2, 32], strides = [1, 1]} : vector<2x128xf32> to vector<2x32xf32>
    %435 = arith.negf %434 : vector<2x32xf32>
    %436 = math.exp %435 : vector<2x32xf32>
    %cst_81 = arith.constant 1.000000e+00 : f32
    %437 = vector.broadcast %cst_81 : f32 to vector<2x32xf32>
    %438 = arith.addf %437, %436 : vector<2x32xf32>
    %439 = arith.divf %437, %438 : vector<2x32xf32>
    %440 = vector.extract_strided_slice %427 {offsets = [0, 64], sizes = [2, 32], strides = [1, 1]} : vector<2x128xf32> to vector<2x32xf32>
    %441 = math.tanh %440 : vector<2x32xf32>
    %442 = vector.extract_strided_slice %427 {offsets = [0, 96], sizes = [2, 32], strides = [1, 1]} : vector<2x128xf32> to vector<2x32xf32>
    %443 = arith.negf %442 : vector<2x32xf32>
    %444 = math.exp %443 : vector<2x32xf32>
    %cst_82 = arith.constant 1.000000e+00 : f32
    %445 = vector.broadcast %cst_82 : f32 to vector<2x32xf32>
    %446 = arith.addf %445, %444 : vector<2x32xf32>
    %447 = arith.divf %445, %446 : vector<2x32xf32>
    %448 = arith.mulf %439, %391 : vector<2x32xf32>
    %449 = arith.mulf %433, %441 : vector<2x32xf32>
    %450 = arith.addf %448, %449 : vector<2x32xf32>
    %451 = math.tanh %450 : vector<2x32xf32>
    %452 = arith.mulf %447, %451 : vector<2x32xf32>
    %453 = tpu.concatenate %452, %421 in 1 : vector<2x32xf32>, vector<2x32xf32> -> vector<2x64xf32>
    %cst_83 = arith.constant dense<0.000000e+00> : vector<2x128xf32>
    %454 = tpu.matmul %453, %1, %cst_83 {dimension_numbers = #tpu.dot_dimension_numbers<[1], [0], [0], [1], [0, 0, 1, 1], [], []>} : vector<2x64xf32>, vector<64x128xf32>, vector<2x128xf32> -> vector<2x128xf32>
    %455 = arith.addf %454, %7 : vector<2x128xf32>
    %456 = vector.extract_strided_slice %455 {offsets = [0, 0], sizes = [2, 32], strides = [1, 1]} : vector<2x128xf32> to vector<2x32xf32>
    %457 = arith.negf %456 : vector<2x32xf32>
    %458 = math.exp %457 : vector<2x32xf32>
    %cst_84 = arith.constant 1.000000e+00 : f32
    %459 = vector.broadcast %cst_84 : f32 to vector<2x32xf32>
    %460 = arith.addf %459, %458 : vector<2x32xf32>
    %461 = arith.divf %459, %460 : vector<2x32xf32>
    %462 = vector.extract_strided_slice %455 {offsets = [0, 32], sizes = [2, 32], strides = [1, 1]} : vector<2x128xf32> to vector<2x32xf32>
    %463 = arith.negf %462 : vector<2x32xf32>
    %464 = math.exp %463 : vector<2x32xf32>
    %cst_85 = arith.constant 1.000000e+00 : f32
    %465 = vector.broadcast %cst_85 : f32 to vector<2x32xf32>
    %466 = arith.addf %465, %464 : vector<2x32xf32>
    %467 = arith.divf %465, %466 : vector<2x32xf32>
    %468 = vector.extract_strided_slice %455 {offsets = [0, 64], sizes = [2, 32], strides = [1, 1]} : vector<2x128xf32> to vector<2x32xf32>
    %469 = math.tanh %468 : vector<2x32xf32>
    %470 = vector.extract_strided_slice %455 {offsets = [0, 96], sizes = [2, 32], strides = [1, 1]} : vector<2x128xf32> to vector<2x32xf32>
    %471 = arith.negf %470 : vector<2x32xf32>
    %472 = math.exp %471 : vector<2x32xf32>
    %cst_86 = arith.constant 1.000000e+00 : f32
    %473 = vector.broadcast %cst_86 : f32 to vector<2x32xf32>
    %474 = arith.addf %473, %472 : vector<2x32xf32>
    %475 = arith.divf %473, %474 : vector<2x32xf32>
    %476 = arith.mulf %467, %419 : vector<2x32xf32>
    %477 = arith.mulf %461, %469 : vector<2x32xf32>
    %478 = arith.addf %476, %477 : vector<2x32xf32>
    %479 = math.tanh %478 : vector<2x32xf32>
    %480 = arith.mulf %475, %479 : vector<2x32xf32>
    %c8_i32 = arith.constant 8 : i32
    %cst_87 = arith.constant 0.000000e+00 : f32
    %481 = vector.broadcast %cst_87 : f32 to vector<2x32xf32>
    %482 = arith.maximumf %480, %481 : vector<2x32xf32>
    %c0_88 = arith.constant 0 : index
    %c0_89 = arith.constant 0 : index
    %483 = vector.load %arg6[%c0_88, %c0_89] : memref<32x128xf32, #tpu.memory_space<vmem>>, vector<32x128xf32>
    %cst_90 = arith.constant dense<0.000000e+00> : vector<2x128xf32>
    %484 = tpu.matmul %482, %483, %cst_90 {dimension_numbers = #tpu.dot_dimension_numbers<[1], [0], [0], [1], [0, 0, 1, 1], [], []>} : vector<2x32xf32>, vector<32x128xf32>, vector<2x128xf32> -> vector<2x128xf32>
    %c0_91 = arith.constant 0 : index
    %c0_92 = arith.constant 0 : index
    %485 = vector.load %arg7[%c0_91, %c0_92] : memref<1x128xf32, #tpu.memory_space<vmem>>, vector<1x128xf32>
    %486 = vector.broadcast %485 : vector<1x128xf32> to vector<2x128xf32>
    %487 = arith.addf %484, %486 : vector<2x128xf32>
    %c0_93 = arith.constant 0 : index
    %c0_94 = arith.constant 0 : index
    %488 = vector.load %arg8[%c0_93, %c0_94] : memref<2x128xf32, #tpu.memory_space<vmem>>, vector<2x128xf32>
    tpu.vector_store %arg8[%c0_93, %c0_94], %487 {strides = array<i32>} : memref<2x128xf32, #tpu.memory_space<vmem>>, vector<2x128xf32>,
    return
  }
  func.func @transform_0(%arg0: i32) -> (i32, i32, i32) {
    %c0_i32 = arith.constant 0 : i32
    %c0_i32_0 = arith.constant 0 : i32
    %c0_i32_1 = arith.constant 0 : i32
    %c0_i32_2 = arith.constant 0 : i32
    return %c0_i32, %c0_i32_0, %c0_i32_1 : i32, i32, i32
  }
  func.func @transform_1(%arg0: i32) -> (i32, i32) {
    %c0_i32 = arith.constant 0 : i32
    %c0_i32_0 = arith.constant 0 : i32
    %c0_i32_1 = arith.constant 0 : i32
    return %c0_i32, %c0_i32_0 : i32, i32
  }
  func.func @transform_2(%arg0: i32) -> (i32, i32) {
    %c0_i32 = arith.constant 0 : i32
    %c0_i32_0 = arith.constant 0 : i32
    %c0_i32_1 = arith.constant 0 : i32
    return %c0_i32, %c0_i32_0 : i32, i32
  }
  func.func @transform_3(%arg0: i32) -> (i32, i32) {
    %c0_i32 = arith.constant 0 : i32
    %c0_i32_0 = arith.constant 0 : i32
    %c0_i32_1 = arith.constant 0 : i32
    return %c0_i32, %c0_i32_0 : i32, i32
  }
  func.func @transform_4(%arg0: i32) -> (i32, i32) {
    %c0_i32 = arith.constant 0 : i32
    %c0_i32_0 = arith.constant 0 : i32
    %c0_i32_1 = arith.constant 0 : i32
    return %c0_i32, %c0_i32_0 : i32, i32
  }
  func.func @transform_5(%arg0: i32) -> (i32, i32) {
    %c0_i32 = arith.constant 0 : i32
    %c0_i32_0 = arith.constant 0 : i32
    %c0_i32_1 = arith.constant 0 : i32
    return %c0_i32, %c0_i32_0 : i32, i32
  }
  func.func @transform_6(%arg0: i32) -> (i32, i32) {
    %c0_i32 = arith.constant 0 : i32
    %c0_i32_0 = arith.constant 0 : i32
    %c0_i32_1 = arith.constant 0 : i32
    return %c0_i32, %c0_i32_0 : i32, i32
  }
  func.func @transform_7(%arg0: i32) -> (i32, i32) {
    %c0_i32 = arith.constant 0 : i32
    %c0_i32_0 = arith.constant 0 : i32
    %c0_i32_1 = arith.constant 0 : i32
    return %c0_i32, %c0_i32_0 : i32, i32
  }
}

</mosaic_0001>

<bundles_post_ra>
// kernel: tpu_custom_call.1
= control target key start
LH: loop header
LB: loop body
LE: loop exit
PB: predicated region body
PF: predicated region fallthrough
CT: control target
= control target key end

     0   :  { %12 = vsyncpa [#allocation3], 0  ;;  %s3248_s0 = inlined_call_operand.hbm [shape: f32[8,2,16], index: 0, kind: input, shape index: {}]   ;;  %s3249_s1 = inlined_call_operand.hbm [shape: f32[48,128], index: 1, kind: input, shape index: {}]   ;;  %s3250_s2 = inlined_call_operand.vmem [shape: f32[1,128], index: 2, kind: input, shape index: {}]   ;;  %s3251_s3 = inlined_call_operand.hbm [shape: f32[64,128], index: 3, kind: input, shape index: {}]   ;;  %s3252_s4 = inlined_call_operand.vmem [shape: f32[1,128], index: 4, kind: input, shape index: {}]   ;;  %s3253_s5 = inlined_call_operand.hbm [shape: f32[32,128], index: 5, kind: input, shape index: {}]   ;;  %s3254_s6 = inlined_call_operand.vmem [shape: f32[1,128], index: 6, kind: input, shape index: {}]   ;;  %s3255_s7 = inlined_call_operand.hbm [shape: f32[2,128], index: 7, kind: output, shape index: {}]  }
   0x1   :  { %13 = vsyncpa [#allocation6], 0 }
   0x2   :  { %14 = vsyncpa [#allocation9], 0 }
   0x3   :  { %15 = vsyncpa [#allocation4], 0  ;;  %s2769_s24 = smov [#allocation5]   ;;  %s2651_s28 = scalar_lea.hbm %s3249_s1, 768 }
   0x4   :  { %s33_s25 = sshll.u32 %s2769_s24, 4  ;;  %p2652_p0 = scmp.ne.s32.totalorder %s3249_s1, %s2651_s28  ;;  %s34_s25 = int_to_ptr.vmem [resolvable:$true] %s33_s25 }
   0x5   :  { %p2655_p1 = scmp.lt.u32.totalorder %s2651_s28, %s3249_s1 }
   0x7   :  { %p2657_p2 = pnand %p2655_p1, %p2652_p0 }
   0x9   :  { %2660 = shalt.err (!%p2657_p2)
}
   0xa   :  { %s2661_s10 = scalar_lea.vmem %s34_s25, 768  ;;  %p2666_p4 = scmp.lt.s32.totalorder %s34_s25, %s34_s25 }
   0xb   :  { %p2662_p3 = scmp.ne.s32.totalorder %s34_s25, %s2661_s10  ;;  %p2667_p5 = scmp.lt.s32.totalorder %s2661_s10, %s2661_s10 }
   0xd   :  { %p2668_p6 = por %p2667_p5, %p2666_p4 }
   0xf   :  { %p2669_p7 = pnand %p2668_p6, %p2662_p3 }
  0x11   :  { %2672 = shalt.err (!%p2669_p7)
}
  0x12   :  { %s2770_s11 = smov 128   ;;  %s2771_s12 = smov 8  }
  0x13   :  { %39 = dma.hbm_to_vmem [thread:$0]  %s3249_s1, 768, %s34_s25, [#allocation6], %s2770_s11, %s2770_s11, %s2771_s12  }
  0x14   :  { %s2772_s15 = smov [#allocation2]   ;;  %s2673_s19 = scalar_lea.hbm %s3248_s0, 256 }
  0x15   :  { %s21_s16 = sshll.u32 %s2772_s15, 4  ;;  %p2674_p8 = scmp.ne.s32.totalorder %s3248_s0, %s2673_s19  ;;  %s22_s16 = int_to_ptr.vmem [resolvable:$true] %s21_s16 }
  0x16   :  { %p2677_p9 = scmp.lt.u32.totalorder %s2673_s19, %s3248_s0 }
  0x18   :  { %p2679_p10 = pnand %p2677_p9, %p2674_p8 }
  0x1a   :  { %2682 = shalt.err (!%p2679_p10)
}
  0x1b   :  { %s2683_s24 = scalar_lea.vmem %s22_s16, 256  ;;  %p2688_p12 = scmp.lt.s32.totalorder %s22_s16, %s22_s16 }
  0x1c   :  { %p2684_p11 = scmp.ne.s32.totalorder %s22_s16, %s2683_s24  ;;  %p2689_p13 = scmp.lt.s32.totalorder %s2683_s24, %s2683_s24 }
  0x1e   :  { %p2690_p0 = por %p2689_p13, %p2688_p12 }
  0x20   :  { %p2691_p1 = pnand %p2690_p0, %p2684_p11 }
  0x22   :  { %2694 = shalt.err (!%p2691_p1)
}
  0x23   :  { %s2773_s1 = smov 32   ;;  %s2774_s25 = smov 2  }
  0x24   :  { %27 = dma.hbm_to_vmem [thread:$0]  %s3248_s0, 256, %s22_s16, [#allocation3], %s2773_s1, %s2773_s1, %s2774_s25  }
  0x25   :  { %s2775_s28 = smov [#allocation7]   ;;  %s2776_s30 = smov [#allocation8]  }
  0x26   :  { %s47_s29 = sshll.u32 %s2775_s28, 4  ;;  %s61_s8 = sshll.u32 %s2776_s30, 4  ;;  %s48_s29 = int_to_ptr.vmem [resolvable:$true] %s47_s29  ;;  %s2852_s8 = int_to_ptr.vmem [resolvable:$true] %s61_s8 }
  0x27   :  { %s2695_s13 = scalar_lea.hbm %s3251_s3, 1024 }
  0x28   :  { %p2696_p2 = scmp.ne.s32.totalorder %s3251_s3, %s2695_s13  ;;  %p2699_p3 = scmp.lt.u32.totalorder %s2695_s13, %s3251_s3 }
  0x2a   :  { %p2701_p4 = pnand %p2699_p3, %p2696_p2 }
  0x2c   :  { %2704 = shalt.err (!%p2701_p4)
}
  0x2d   :  { %s2705_s0 = scalar_lea.vmem %s48_s29, 1024  ;;  %p2710_p6 = scmp.lt.s32.totalorder %s48_s29, %s48_s29 }
  0x2e   :  { %p2706_p5 = scmp.ne.s32.totalorder %s48_s29, %s2705_s0  ;;  %p2711_p7 = scmp.lt.s32.totalorder %s2705_s0, %s2705_s0 }
  0x30   :  { %p2712_p8 = por %p2711_p7, %p2710_p6 }
  0x32   :  { %p2713_p9 = pnand %p2712_p8, %p2706_p5 }
  0x34   :  { %2716 = shalt.err (!%p2713_p9)
}
  0x35   :  { %53 = dma.hbm_to_vmem [thread:$0]  %s3251_s3, 1024, %s48_s29, [#allocation6], %s2770_s11, %s2770_s11, %s2771_s12  }
  0x36   :  { %s2717_s22 = scalar_lea.hbm %s3253_s5, 512 }
  0x37   :  { %p2718_p10 = scmp.ne.s32.totalorder %s3253_s5, %s2717_s22  ;;  %p2721_p11 = scmp.lt.u32.totalorder %s2717_s22, %s3253_s5 }
  0x39   :  { %p2723_p12 = pnand %p2721_p11, %p2718_p10 }
  0x3b   :  { %2726 = shalt.err (!%p2723_p12)
}
  0x3c   :  { %s2727_s27 = scalar_lea.vmem %s2852_s8, 512  ;;  %p2732_p0 = scmp.lt.s32.totalorder %s2852_s8, %s2852_s8 }
  0x3d   :  { %p2728_p13 = scmp.ne.s32.totalorder %s2852_s8, %s2727_s27  ;;  %p2733_p1 = scmp.lt.s32.totalorder %s2727_s27, %s2727_s27 }
  0x3f   :  { %p2734_p2 = por %p2733_p1, %p2732_p0 }
  0x41   :  { %p2735_p3 = pnand %p2734_p2, %p2728_p13 }
  0x43   :  { %2738 = shalt.err (!%p2735_p3)
}
  0x44   :  { %67 = dma.hbm_to_vmem [thread:$0]  %s3253_s5, 512, %s2852_s8, [#allocation9], %s2770_s11, %s2770_s11, %s2771_s12  }
  0x45   :  { %2761 = dma.done.wait [#allocation3], 256  }
  0x46   :  { %2762 = vsyncadd [#allocation3], 4294967040 }
  0x47   :  { %2763 = dma.done.wait [#allocation6], 1792  }
  0x48   :  { %2764 = vsyncadd [#allocation6], 4294965504 }
  0x49   :  { %2765 = dma.done.wait [#allocation9], 512  }
  0x4a   :  { %2766 = vsyncadd [#allocation9], 4294966784  ;;  %v2777_v0 = vmov 0.0|0.0   ;;  %vm2778_vm0 = vmmov 0   ;;  %v2779_v1 = vmov 0.0   ;;  %v82_v2 = vld [vmem:[#allocation5] sm:$0xff] }
  0x4b   :  { %2335 = vmatprep.subr.bf16.mxu0 %v2777_v0  ;;  %2064 = vmatprep.mubr.msk.f32.mxu0 %vm2778_vm0, %v2779_v1  ;;  %v83_v3 = vld [vmem:[#allocation5 + $0x8] sm:$0xff]  ;;  %v84_v4 = vld [vmem:[#allocation5 + $0x10] sm:$0xff]  ;;  %v85_v6 = vld [vmem:[#allocation5 + $0x18] sm:$0xff]  ;;  %vm111_vm1 = vcmask 130048   ;;  %vm113_vm2 = vcmask 392192   ;;  %s2780_s12 = smov 64  }
  0x4c   :  { %2344 = vmatprep.subr.bf16.mxu1 %v2777_v0  ;;  %2083 = vmatprep.mubr.msk.f32.mxu1 %vm2778_vm0, %v2779_v1  ;;  %v2895_v5 = vpack.c.bf16 %v83_v3, %v82_v2  ;;  %v2898_v7 = vpack.c.bf16 %v85_v6, %v84_v4  ;;  %v86_v8 = vld [vmem:[#allocation5 + $0x20] sm:$0xff]  ;;  %v87_v9 = vld [vmem:[#allocation5 + $0x28] sm:$0xff]  ;;  %v110_v11 = vld [vmem:[#allocation2] sm:$0x3]  ;;  %vm215_vm3 = vcmask 261120   ;;  %vm217_vm4 = vcmask 523264  }
  0x4d   :  { %v2902_v10 = vpack.c.bf16 %v87_v9, %v86_v8  ;;  %v112_v12 = vsel %vm111_vm1, %v110_v11, 0.0  ;;  %v2920_v13 = vld [vmem:[%s3250_s2] ss:$0 sm:$0xff]  ;;  %v89_v28 = vld [vmem:[#allocation7 + $0x8] sm:$0xff]  ;;  %v90_v29 = vld [vmem:[#allocation7 + $0x10] sm:$0xff]  ;;  %s2781_s2 = smov 48  }
  0x4e   :  { %2337 = vmatpush3.bf16.msra.mxu0 %v2895_v5  ;;  %v88_v27 = vld [vmem:[#allocation7] sm:$0xff]  ;;  %v91_v31 = vld [vmem:[#allocation7 + $0x18] sm:$0xff]  ;;  %v93_v34 = vld [vmem:[#allocation7 + $0x28] sm:$0xff]  ;;  %s2782_s9 = smov [#allocation10]  }
  0x4f   :  { %2338 = vmatprep.subr.bf16.mxu0 %v2777_v0  ;;  %v2928_v30 = vpack.c.bf16 %v89_v28, %v88_v27  ;;  %v2931_v32 = vpack.c.bf16 %v91_v31, %v90_v29  ;;  %v92_v33 = vld [vmem:[#allocation7 + $0x20] sm:$0xff]  ;;  %v94_v36 = vld [vmem:[#allocation7 + $0x30] sm:$0xff]  ;;  %v95_v37 = vld [vmem:[#allocation7 + $0x38] sm:$0xff]  ;;  %s1872_s10 = sshll.u32 %s2782_s9, 4  ;;  %s1873_s10 = int_to_ptr.vmem [resolvable:$true] %s1872_s10 }
  0x50   :  { %v2935_v35 = vpack.c.bf16 %v93_v34, %v92_v33  ;;  %v2940_v39 = vpack.c.bf16 %v95_v37, %v94_v36  ;;  %v316_v42 = vld [vmem:[#allocation2 + $0x2] sm:$0x3]  ;;  %v2972_v47 = vld [vmem:[%s3252_s4] ss:$0 sm:$0xff]  ;;  %s2739_s13 = scalar_lea.vmem %s1873_s10, 32  ;;  %p2744_p5 = scmp.lt.s32.totalorder %s1873_s10, %s1873_s10 }
  0x51   :  { %2346 = vmatpush3.bf16.msra.mxu1 %v2928_v30  ;;  %p2740_p4 = scmp.ne.s32.totalorder %s1873_s10, %s2739_s13  ;;  %p2745_p6 = scmp.lt.s32.totalorder %s2739_s13, %s2739_s13 }
  0x52   :  { %2340 = vmatpush3.bf16.msra.mxu0 %v2898_v7  ;;  %2347 = vmatprep.subr.bf16.mxu1 %v2777_v0 }
  0x53   :  { %2341 = vmatprep.subr.bf16.mxu0 %v2777_v0  ;;  %p2746_p7 = por %p2745_p6, %p2744_p5 }
  0x55   :  { %2349 = vmatpush3.bf16.msra.mxu1 %v2931_v32  ;;  %p2747_p8 = pnand %p2746_p7, %p2740_p4 }
  0x56   :  { %2343 = vmatpush3.bf16.msra.mxu0 %v2902_v10  ;;  %2350 = vmatprep.subr.bf16.mxu1 %v2777_v0 }
  0x57   :  { %2356 = vmatprep.subr.bf16.mxu0 %v2777_v0 }
  0x59   :  { %2065 = vmatmul.mubr.msk.f32.vlgmr.msra.gmra.mrb[0].mxu0 %vm113_vm2, %v112_v12  ;;  %2352 = vmatpush3.bf16.msra.mxu1 %v2935_v35 }
  0x5a   :  { %2358 = vmatpush3.bf16.msra.mxu0 %v2895_v5  ;;  %2098 = vmatprep.mubr.msk.f32.mxu0 %vm2778_vm0, %v2779_v1 }
  0x5b   :  { %2359 = vmatprep.subr.bf16.mxu0 %v2777_v0  ;;  %2353 = vmatprep.subr.bf16.mxu1 %v2777_v0 }
  0x5d   :  { %2355 = vmatpush3.bf16.msra.mxu1 %v2940_v39 }
  0x5e   :  { %2361 = vmatpush3.bf16.msra.mxu0 %v2898_v7  ;;  %2365 = vmatprep.subr.bf16.mxu1 %v2777_v0 }
  0x5f   :  { %2362 = vmatprep.subr.bf16.mxu0 %v2777_v0 }
  0x62   :  { %2364 = vmatpush3.bf16.msra.mxu0 %v2902_v10 }
  0x63   :  { %2377 = vmatprep.subr.bf16.mxu0 %v2777_v0 }
 0x12c   :  { %v183_v14 = vpop.f32.mrb[0].mxu0 }
 0x12d   :  { %v184_v15 = vadd.f32 %v2920_v13, %v183_v14  ;;  %v2066_v16 = vpop.f32.mrb[1].mxu0 }
 0x12f   :  { %2523 = vtanh.f32 %v184_v15  ;;  %v1886_v18 = vmul.f32 -1.442695, %v184_v15 }
 0x131   :  { %2525 = vpow2.f32 %v1886_v18 }
 0x139   :  { %v2524_v17 = vpop.eup %2523 }
 0x13a   :  { %196 = vrot.lane.b32.xlu0 %v2524_v17, %s2780_s12 }
 0x13b   :  { %v2526_v19 = vpop.eup %2525 }
 0x13c   :  { %v190_v20 = vadd.f32 1.0, %v2526_v19 }
 0x13e   :  { %2527 = vrcp.f32 %v190_v20 }
 0x148   :  { %v2528_v21 = vpop.eup %2527 }
 0x149   :  { %v194_v24 = vmul.f32 0.0, %v2528_v21 }
 0x1ac   :  { %v197_v22 = vpop.permute.xlu0 %196 }
 0x1ad   :  { %v199_v23 = vmul.f32 %v2528_v21, %v197_v22 }
 0x1af   :  { %201 = vrot.lane.b32.xlu0 %v199_v23, %s2773_s1 }
 0x221   :  { %v202_v25 = vpop.permute.xlu0 %201 }
 0x222   :  { %v2925_v26 = vadd.f32 %v202_v25, %v194_v24  ;;  %v525_v25 = vld [vmem:[#allocation2 + $0x4] sm:$0x3] }
 0x224   :  { %2529 = vtanh.f32 %v2925_v26 }
 0x22e   :  { %v2530_v38 = vpop.eup %2529 }
 0x22f   :  { %207 = vrot.lane.b32.xlu1 %v2530_v38, %s2780_s12 }
 0x2a1   :  { %v208_v40 = vpop.permute.xlu1 %207 }
 0x2a2   :  { %v210_v41 = vmul.f32 %v2528_v21, %v208_v40 }
 0x2a4   :  { %317 = vrot.lane.b32.xlu0 %v210_v41, %s2781_s2  ;;  %212 = vrot.lane.b32.xlu1 %v210_v41, %s2773_s1 }
 0x316   :  { %v318_v43 = vpop.permute.xlu0 %317  ;;  %v213_v44 = vpop.permute.xlu1 %212 }
 0x317   :  { %v320_v45 = vsel %vm111_vm1, %v316_v42, %v318_v43  ;;  %v216_v46 = vsel %vm215_vm3, %v213_v44, 0.0 }
 0x318   :  { %2084 = vmatmul.mubr.msk.f32.vlgmr.msra.gmra.mrb[0].mxu1 %vm217_vm4, %v216_v46  ;;  %2099 = vmatmul.mubr.msk.f32.vlgmr.msra.gmra.mrb[2].mxu0 %vm113_vm2, %v320_v45 }
 0x319   :  { %2367 = vmatpush3.bf16.msra.mxu1 %v2928_v30  ;;  %2379 = vmatpush3.bf16.msra.mxu0 %v2895_v5 }
 0x31a   :  { %2368 = vmatprep.subr.bf16.mxu1 %v2777_v0  ;;  %2380 = vmatprep.subr.bf16.mxu0 %v2777_v0 }
 0x31b   :  { %2117 = vmatprep.mubr.msk.f32.mxu1 %vm2778_vm0, %v2779_v1  ;;  %2132 = vmatprep.mubr.msk.f32.mxu0 %vm2778_vm0, %v2779_v1 }
 0x31d   :  { %2370 = vmatpush3.bf16.msra.mxu1 %v2931_v32  ;;  %2382 = vmatpush3.bf16.msra.mxu0 %v2898_v7 }
 0x31e   :  { %2371 = vmatprep.subr.bf16.mxu1 %v2777_v0  ;;  %2383 = vmatprep.subr.bf16.mxu0 %v2777_v0 }
 0x321   :  { %2373 = vmatpush3.bf16.msra.mxu1 %v2935_v35  ;;  %2385 = vmatpush3.bf16.msra.mxu0 %v2902_v10 }
 0x322   :  { %2374 = vmatprep.subr.bf16.mxu1 %v2777_v0  ;;  %2398 = vmatprep.subr.bf16.mxu0 %v2777_v0 }
 0x325   :  { %2376 = vmatpush3.bf16.msra.mxu1 %v2940_v39 }
 0x326   :  { %2386 = vmatprep.subr.bf16.mxu1 %v2777_v0 }
 0x3eb   :  { %v287_v48 = vpop.f32.mrb[0].mxu1  ;;  %v390_v49 = vpop.f32.mrb[2].mxu0 }
 0x3ec   :  { %v288_v50 = vadd.f32 %v2972_v47, %v287_v48  ;;  %v391_v51 = vadd.f32 %v2920_v13, %v390_v49  ;;  %v2085_v52 = vpop.f32.mrb[1].mxu1  ;;  %v2100_v53 = vpop.f32.mrb[3].mxu0 }
 0x3ee   :  { %2531 = vtanh.f32 %v288_v50  ;;  %v1888_v56 = vmul.f32 -1.442695, %v288_v50  ;;  %v1890_v57 = vmul.f32 -1.442695, %v391_v51 }
 0x3ef   :  { %2533 = vtanh.f32 %v391_v51 }
 0x3f0   :  { %2535 = vpow2.f32 %v1888_v56 }
 0x3f1   :  { %2537 = vpow2.f32 %v1890_v57 }
 0x3f8   :  { %v2532_v54 = vpop.eup %2531 }
 0x3f9   :  { %v2534_v55 = vpop.eup %2533  ;;  %300 = vrot.lane.b32.xlu1 %v2532_v54, %s2780_s12 }
 0x3fa   :  { %403 = vrot.lane.b32.xlu0 %v2534_v55, %s2780_s12  ;;  %v2536_v58 = vpop.eup %2535 }
 0x3fb   :  { %v2538_v59 = vpop.eup %2537  ;;  %v294_v60 = vadd.f32 1.0, %v2536_v58 }
 0x3fc   :  { %v397_v61 = vadd.f32 1.0, %v2538_v59 }
 0x3fd   :  { %2539 = vrcp.f32 %v294_v60 }
 0x3fe   :  { %2541 = vrcp.f32 %v397_v61 }
 0x407   :  { %v2540_v62 = vpop.eup %2539 }
 0x408   :  { %v2542_v2 = vpop.eup %2541  ;;  %v298_v8 = vmul.f32 0.0, %v2540_v62 }
 0x409   :  { %v401_v11 = vmul.f32 %v2542_v2, %v2925_v26 }
 0x46b   :  { %v301_v63 = vpop.permute.xlu1 %300 }
 0x46c   :  { %v303_v3 = vmul.f32 %v2540_v62, %v301_v63  ;;  %v404_v4 = vpop.permute.xlu0 %403 }
 0x46d   :  { %v406_v6 = vmul.f32 %v2542_v2, %v404_v4 }
 0x46e   :  { %305 = vrot.lane.b32.xlu1 %v303_v3, %s2773_s1 }
 0x46f   :  { %408 = vrot.lane.b32.xlu0 %v406_v6, %s2773_s1 }
 0x4e0   :  { %v306_v9 = vpop.permute.xlu1 %305 }
 0x4e1   :  { %v2981_v12 = vadd.f32 %v306_v9, %v298_v8  ;;  %v409_v14 = vpop.permute.xlu0 %408  ;;  %v734_v8 = vld [vmem:[#allocation2 + $0x6] sm:$0x3] }
 0x4e2   :  { %v2983_v15 = vadd.f32 %v409_v14, %v401_v11 }
 0x4e3   :  { %2543 = vtanh.f32 %v2981_v12 }
 0x4e4   :  { %2545 = vtanh.f32 %v2983_v15 }
 0x4ed   :  { %v2544_v16 = vpop.eup %2543 }
 0x4ee   :  { %v2546_v17 = vpop.eup %2545  ;;  %311 = vrot.lane.b32.xlu1 %v2544_v16, %s2780_s12 }
 0x4ef   :  { %414 = vrot.lane.b32.xlu0 %v2546_v17, %s2780_s12 }
 0x560   :  { %v312_v18 = vpop.permute.xlu1 %311 }
 0x561   :  { %v314_v19 = vmul.f32 %v2540_v62, %v312_v18  ;;  %v415_v20 = vpop.permute.xlu0 %414 }
 0x562   :  { %v417_v21 = vmul.f32 %v2542_v2, %v415_v20 }
 0x563   :  { %423 = vrot.lane.b32.xlu0 %v314_v19, %s2780_s12 }
 0x564   :  { %419 = vrot.lane.b32.xlu1 %v417_v21, %s2773_s1 }
 0x568   :  { %526 = vrot.lane.b32.xlu1 %v417_v21, %s2781_s2 }
 0x5d5   :  { %v424_v22 = vpop.permute.xlu0 %423 }
 0x5d6   :  { %v420_v23 = vpop.permute.xlu1 %419 }
 0x5d7   :  { %v426_v24 = vsel %vm215_vm3, %v420_v23, %v424_v22 }
 0x5d8   :  { %2118 = vmatmul.mubr.msk.f32.vlgmr.msra.gmra.mrb[2].mxu1 %vm217_vm4, %v426_v24 }
 0x5d9   :  { %2388 = vmatpush3.bf16.msra.mxu1 %v2928_v30  ;;  %2151 = vmatprep.mubr.msk.f32.mxu1 %vm2778_vm0, %v2779_v1 }
 0x5da   :  { %v527_v26 = vpop.permute.xlu1 %526  ;;  %2389 = vmatprep.subr.bf16.mxu1 %v2777_v0 }
 0x5db   :  { %v529_v27 = vsel %vm111_vm1, %v525_v25, %v527_v26 }
 0x5dc   :  { %2133 = vmatmul.mubr.msk.f32.vlgmr.msra.gmra.mrb[4].mxu0 %vm113_vm2, %v529_v27 }
 0x5dd   :  { %2391 = vmatpush3.bf16.msra.mxu1 %v2931_v32  ;;  %2400 = vmatpush3.bf16.msra.mxu0 %v2895_v5 }
 0x5de   :  { %2392 = vmatprep.subr.bf16.mxu1 %v2777_v0  ;;  %2401 = vmatprep.subr.bf16.mxu0 %v2777_v0 }
 0x5df   :  { %2166 = vmatprep.mubr.msk.f32.mxu0 %vm2778_vm0, %v2779_v1 }
 0x5e1   :  { %2394 = vmatpush3.bf16.msra.mxu1 %v2935_v35  ;;  %2403 = vmatpush3.bf16.msra.mxu0 %v2898_v7 }
 0x5e2   :  { %2395 = vmatprep.subr.bf16.mxu1 %v2777_v0  ;;  %2404 = vmatprep.subr.bf16.mxu0 %v2777_v0 }
 0x5e5   :  { %2397 = vmatpush3.bf16.msra.mxu1 %v2940_v39  ;;  %2406 = vmatpush3.bf16.msra.mxu0 %v2902_v10 }
 0x5e6   :  { %2407 = vmatprep.subr.bf16.mxu0 %v2777_v0  ;;  %2419 = vmatprep.subr.bf16.mxu1 %v2777_v0 }
 0x6ab   :  { %v496_v28 = vpop.f32.mrb[2].mxu1 }
 0x6ac   :  { %v497_v29 = vadd.f32 %v2972_v47, %v496_v28  ;;  %v2119_v31 = vpop.f32.mrb[3].mxu1 }
 0x6ae   :  { %2547 = vtanh.f32 %v497_v29  ;;  %v1892_v40 = vmul.f32 -1.442695, %v497_v29 }
 0x6af   :  { %v599_v33 = vpop.f32.mrb[4].mxu0 }
 0x6b0   :  { %v600_v34 = vadd.f32 %v2920_v13, %v599_v33  ;;  %v2134_v36 = vpop.f32.mrb[5].mxu0 }
 0x6b2   :  { %2549 = vtanh.f32 %v600_v34  ;;  %v1894_v41 = vmul.f32 -1.442695, %v600_v34 }
 0x6b3   :  { %2551 = vpow2.f32 %v1892_v40 }
 0x6b4   :  { %2553 = vpow2.f32 %v1894_v41 }
 0x6b8   :  { %v2548_v37 = vpop.eup %2547 }
 0x6b9   :  { %509 = vrot.lane.b32.xlu0 %v2548_v37, %s2780_s12 }
 0x6bc   :  { %v2550_v38 = vpop.eup %2549 }
 0x6bd   :  { %612 = vrot.lane.b32.xlu1 %v2550_v38, %s2780_s12  ;;  %v2552_v42 = vpop.eup %2551 }
 0x6be   :  { %v503_v43 = vadd.f32 1.0, %v2552_v42  ;;  %v2554_v44 = vpop.eup %2553 }
 0x6bf   :  { %v606_v45 = vadd.f32 1.0, %v2554_v44 }
 0x6c0   :  { %2555 = vrcp.f32 %v503_v43 }
 0x6c1   :  { %2557 = vrcp.f32 %v606_v45 }
 0x6ca   :  { %v2556_v46 = vpop.eup %2555 }
 0x6cb   :  { %v2558_v50 = vpop.eup %2557  ;;  %v507_v53 = vmul.f32 %v2556_v46, %v2981_v12 }
 0x6cc   :  { %v610_v56 = vmul.f32 %v2558_v50, %v2983_v15 }
 0x72b   :  { %v510_v48 = vpop.permute.xlu0 %509 }
 0x72c   :  { %v512_v49 = vmul.f32 %v2556_v46, %v510_v48 }
 0x72e   :  { %514 = vrot.lane.b32.xlu0 %v512_v49, %s2773_s1 }
 0x72f   :  { %v613_v51 = vpop.permute.xlu1 %612 }
 0x730   :  { %v615_v52 = vmul.f32 %v2558_v50, %v613_v51 }
 0x732   :  { %617 = vrot.lane.b32.xlu1 %v615_v52, %s2773_s1 }
 0x7a0   :  { %v515_v54 = vpop.permute.xlu0 %514 }
 0x7a1   :  { %v3021_v55 = vadd.f32 %v515_v54, %v507_v53  ;;  %v943_v53 = vld [vmem:[#allocation2 + $0x8] sm:$0x3] }
 0x7a3   :  { %2559 = vtanh.f32 %v3021_v55 }
 0x7a4   :  { %v618_v57 = vpop.permute.xlu1 %617 }
 0x7a5   :  { %v3025_v58 = vadd.f32 %v618_v57, %v610_v56 }
 0x7a7   :  { %2561 = vtanh.f32 %v3025_v58 }
 0x7ad   :  { %v2560_v59 = vpop.eup %2559 }
 0x7ae   :  { %520 = vrot.lane.b32.xlu0 %v2560_v59, %s2780_s12 }
 0x7b1   :  { %v2562_v60 = vpop.eup %2561 }
 0x7b2   :  { %623 = vrot.lane.b32.xlu1 %v2562_v60, %s2780_s12 }
 0x820   :  { %v521_v61 = vpop.permute.xlu0 %520 }
 0x821   :  { %v523_v62 = vmul.f32 %v2556_v46, %v521_v61 }
 0x823   :  { %632 = vrot.lane.b32.xlu1 %v523_v62, %s2780_s12 }
 0x824   :  { %v624_v63 = vpop.permute.xlu1 %623 }
 0x825   :  { %v626_v2 = vmul.f32 %v2558_v50, %v624_v63 }
 0x827   :  { %628 = vrot.lane.b32.xlu0 %v626_v2, %s2773_s1 }
 0x82b   :  { %735 = vrot.lane.b32.xlu0 %v626_v2, %s2781_s2 }
 0x895   :  { %v633_v3 = vpop.permute.xlu1 %632 }
 0x899   :  { %v629_v4 = vpop.permute.xlu0 %628 }
 0x89a   :  { %v635_v6 = vsel %vm215_vm3, %v629_v4, %v633_v3 }
 0x89b   :  { %2152 = vmatmul.mubr.msk.f32.vlgmr.msra.gmra.mrb[4].mxu1 %vm217_vm4, %v635_v6 }
 0x89c   :  { %2421 = vmatpush3.bf16.msra.mxu1 %v2895_v5  ;;  %2200 = vmatprep.mubr.msk.f32.mxu1 %vm2778_vm0, %v2779_v1 }
 0x89d   :  { %v736_v9 = vpop.permute.xlu0 %735  ;;  %2422 = vmatprep.subr.bf16.mxu1 %v2777_v0 }
 0x89e   :  { %v738_v11 = vsel %vm111_vm1, %v734_v8, %v736_v9 }
 0x89f   :  { %2167 = vmatmul.mubr.msk.f32.vlgmr.msra.gmra.mrb[6].mxu0 %vm113_vm2, %v738_v11 }
 0x8a0   :  { %2409 = vmatpush3.bf16.msra.mxu0 %v2928_v30  ;;  %2424 = vmatpush3.bf16.msra.mxu1 %v2898_v7 }
 0x8a1   :  { %2410 = vmatprep.subr.bf16.mxu0 %v2777_v0  ;;  %2185 = vmatprep.mubr.msk.f32.mxu0 %vm2778_vm0, %v2779_v1 }
 0x8a2   :  { %2425 = vmatprep.subr.bf16.mxu1 %v2777_v0 }
 0x8a4   :  { %2412 = vmatpush3.bf16.msra.mxu0 %v2931_v32  ;;  %2427 = vmatpush3.bf16.msra.mxu1 %v2902_v10 }
 0x8a5   :  { %2413 = vmatprep.subr.bf16.mxu0 %v2777_v0  ;;  %2428 = vmatprep.subr.bf16.mxu1 %v2777_v0 }
 0x8a8   :  { %2415 = vmatpush3.bf16.msra.mxu0 %v2935_v35 }
 0x8a9   :  { %2416 = vmatprep.subr.bf16.mxu0 %v2777_v0 }
 0x8ac   :  { %2418 = vmatpush3.bf16.msra.mxu0 %v2940_v39 }
 0x8ad   :  { %2440 = vmatprep.subr.bf16.mxu0 %v2777_v0 }
 0x96e   :  { %v705_v12 = vpop.f32.mrb[4].mxu1 }
 0x96f   :  { %v706_v14 = vadd.f32 %v2972_v47, %v705_v12  ;;  %v2153_v15 = vpop.f32.mrb[5].mxu1 }
 0x971   :  { %2563 = vtanh.f32 %v706_v14  ;;  %v1896_v21 = vmul.f32 -1.442695, %v706_v14 }
 0x972   :  { %v808_v16 = vpop.f32.mrb[6].mxu0 }
 0x973   :  { %v809_v17 = vadd.f32 %v2920_v13, %v808_v16  ;;  %v2168_v18 = vpop.f32.mrb[7].mxu0 }
 0x975   :  { %2565 = vtanh.f32 %v809_v17  ;;  %v1898_v22 = vmul.f32 -1.442695, %v809_v17 }
 0x976   :  { %2567 = vpow2.f32 %v1896_v21 }
 0x977   :  { %2569 = vpow2.f32 %v1898_v22 }
 0x97b   :  { %v2564_v19 = vpop.eup %2563 }
 0x97c   :  { %718 = vrot.lane.b32.xlu1 %v2564_v19, %s2780_s12 }
 0x97f   :  { %v2566_v20 = vpop.eup %2565 }
 0x980   :  { %821 = vrot.lane.b32.xlu0 %v2566_v20, %s2780_s12  ;;  %v2568_v23 = vpop.eup %2567 }
 0x981   :  { %v712_v24 = vadd.f32 1.0, %v2568_v23  ;;  %v2570_v25 = vpop.eup %2569 }
 0x982   :  { %v815_v26 = vadd.f32 1.0, %v2570_v25 }
 0x983   :  { %2571 = vrcp.f32 %v712_v24 }
 0x984   :  { %2573 = vrcp.f32 %v815_v26 }
 0x98d   :  { %v2572_v27 = vpop.eup %2571 }
 0x98e   :  { %v2574_v31 = vpop.eup %2573  ;;  %v716_v36 = vmul.f32 %v2572_v27, %v3021_v55 }
 0x98f   :  { %v819_v40 = vmul.f32 %v2574_v31, %v3025_v58 }
 0x9ee   :  { %v719_v28 = vpop.permute.xlu1 %718 }
 0x9ef   :  { %v721_v29 = vmul.f32 %v2572_v27, %v719_v28 }
 0x9f1   :  { %723 = vrot.lane.b32.xlu1 %v721_v29, %s2773_s1 }
 0x9f2   :  { %v822_v33 = vpop.permute.xlu0 %821 }
 0x9f3   :  { %v824_v34 = vmul.f32 %v2574_v31, %v822_v33 }
 0x9f5   :  { %826 = vrot.lane.b32.xlu0 %v824_v34, %s2773_s1 }
 0xa63   :  { %v724_v37 = vpop.permute.xlu1 %723 }
 0xa64   :  { %v3062_v38 = vadd.f32 %v724_v37, %v716_v36  ;;  %v1152_v36 = vld [vmem:[#allocation2 + $0xa] sm:$0x3] }
 0xa66   :  { %2575 = vtanh.f32 %v3062_v38 }
 0xa67   :  { %v827_v41 = vpop.permute.xlu0 %826 }
 0xa68   :  { %v3066_v42 = vadd.f32 %v827_v41, %v819_v40 }
 0xa6a   :  { %2577 = vtanh.f32 %v3066_v42 }
 0xa70   :  { %v2576_v43 = vpop.eup %2575 }
 0xa71   :  { %729 = vrot.lane.b32.xlu1 %v2576_v43, %s2780_s12 }
 0xa74   :  { %v2578_v44 = vpop.eup %2577 }
 0xa75   :  { %832 = vrot.lane.b32.xlu0 %v2578_v44, %s2780_s12 }
 0xae3   :  { %v730_v45 = vpop.permute.xlu1 %729 }
 0xae4   :  { %v732_v46 = vmul.f32 %v2572_v27, %v730_v45 }
 0xae6   :  { %841 = vrot.lane.b32.xlu0 %v732_v46, %s2780_s12 }
 0xae7   :  { %v833_v48 = vpop.permute.xlu0 %832 }
 0xae8   :  { %v835_v49 = vmul.f32 %v2574_v31, %v833_v48 }
 0xaea   :  { %837 = vrot.lane.b32.xlu1 %v835_v49, %s2773_s1 }
 0xaee   :  { %944 = vrot.lane.b32.xlu1 %v835_v49, %s2781_s2 }
 0xb58   :  { %v842_v50 = vpop.permute.xlu0 %841 }
 0xb5c   :  { %v838_v51 = vpop.permute.xlu1 %837 }
 0xb5d   :  { %v844_v52 = vsel %vm215_vm3, %v838_v51, %v842_v50 }
 0xb5e   :  { %2186 = vmatmul.mubr.msk.f32.vlgmr.msra.gmra.mrb[8].mxu0 %vm217_vm4, %v844_v52 }
 0xb5f   :  { %2442 = vmatpush3.bf16.msra.mxu0 %v2895_v5  ;;  %2234 = vmatprep.mubr.msk.f32.mxu0 %vm2778_vm0, %v2779_v1 }
 0xb60   :  { %v945_v54 = vpop.permute.xlu1 %944  ;;  %2443 = vmatprep.subr.bf16.mxu0 %v2777_v0 }
 0xb61   :  { %v947_v55 = vsel %vm111_vm1, %v943_v53, %v945_v54 }
 0xb62   :  { %2201 = vmatmul.mubr.msk.f32.vlgmr.msra.gmra.mrb[6].mxu1 %vm113_vm2, %v947_v55 }
 0xb63   :  { %2430 = vmatpush3.bf16.msra.mxu1 %v2928_v30  ;;  %2445 = vmatpush3.bf16.msra.mxu0 %v2898_v7 }
 0xb64   :  { %2431 = vmatprep.subr.bf16.mxu1 %v2777_v0  ;;  %2219 = vmatprep.mubr.msk.f32.mxu1 %vm2778_vm0, %v2779_v1 }
 0xb65   :  { %2446 = vmatprep.subr.bf16.mxu0 %v2777_v0 }
 0xb67   :  { %2433 = vmatpush3.bf16.msra.mxu1 %v2931_v32  ;;  %2448 = vmatpush3.bf16.msra.mxu0 %v2902_v10 }
 0xb68   :  { %2434 = vmatprep.subr.bf16.mxu1 %v2777_v0  ;;  %2449 = vmatprep.subr.bf16.mxu0 %v2777_v0 }
 0xb6b   :  { %2436 = vmatpush3.bf16.msra.mxu1 %v2935_v35 }
 0xb6c   :  { %2437 = vmatprep.subr.bf16.mxu1 %v2777_v0 }
 0xb6f   :  { %2439 = vmatpush3.bf16.msra.mxu1 %v2940_v39 }
 0xb70   :  { %2461 = vmatprep.subr.bf16.mxu1 %v2777_v0 }
 0xc31   :  { %v914_v56 = vpop.f32.mrb[8].mxu0 }
 0xc32   :  { %v915_v57 = vadd.f32 %v2972_v47, %v914_v56  ;;  %v2187_v58 = vpop.f32.mrb[9].mxu0 }
 0xc34   :  { %2579 = vtanh.f32 %v915_v57  ;;  %v1900_v2 = vmul.f32 -1.442695, %v915_v57 }
 0xc35   :  { %v1017_v59 = vpop.f32.mrb[6].mxu1 }
 0xc36   :  { %v1018_v60 = vadd.f32 %v2920_v13, %v1017_v59  ;;  %v2202_v61 = vpop.f32.mrb[7].mxu1 }
 0xc38   :  { %2581 = vtanh.f32 %v1018_v60  ;;  %v1902_v3 = vmul.f32 -1.442695, %v1018_v60 }
 0xc39   :  { %2583 = vpow2.f32 %v1900_v2 }
 0xc3a   :  { %2585 = vpow2.f32 %v1902_v3 }
 0xc3e   :  { %v2580_v62 = vpop.eup %2579 }
 0xc3f   :  { %927 = vrot.lane.b32.xlu0 %v2580_v62, %s2780_s12 }
 0xc42   :  { %v2582_v63 = vpop.eup %2581 }
 0xc43   :  { %1030 = vrot.lane.b32.xlu1 %v2582_v63, %s2780_s12  ;;  %v2584_v4 = vpop.eup %2583 }
 0xc44   :  { %v921_v6 = vadd.f32 1.0, %v2584_v4  ;;  %v2586_v8 = vpop.eup %2585 }
 0xc45   :  { %v1024_v9 = vadd.f32 1.0, %v2586_v8 }
 0xc46   :  { %2587 = vrcp.f32 %v921_v6 }
 0xc47   :  { %2589 = vrcp.f32 %v1024_v9 }
 0xc50   :  { %v2588_v11 = vpop.eup %2587 }
 0xc51   :  { %v2590_v15 = vpop.eup %2589  ;;  %v925_v18 = vmul.f32 %v2588_v11, %v3062_v38 }
 0xc52   :  { %v1028_v21 = vmul.f32 %v2590_v15, %v3066_v42 }
 0xcb1   :  { %v928_v12 = vpop.permute.xlu0 %927 }
 0xcb2   :  { %v930_v14 = vmul.f32 %v2588_v11, %v928_v12 }
 0xcb4   :  { %932 = vrot.lane.b32.xlu0 %v930_v14, %s2773_s1 }
 0xcb5   :  { %v1031_v16 = vpop.permute.xlu1 %1030 }
 0xcb6   :  { %v1033_v17 = vmul.f32 %v2590_v15, %v1031_v16 }
 0xcb8   :  { %1035 = vrot.lane.b32.xlu1 %v1033_v17, %s2773_s1 }
 0xd26   :  { %v933_v19 = vpop.permute.xlu0 %932 }
 0xd27   :  { %v3103_v20 = vadd.f32 %v933_v19, %v925_v18  ;;  %v1361_v18 = vld [vmem:[#allocation2 + $0xc] sm:$0x3] }
 0xd29   :  { %2591 = vtanh.f32 %v3103_v20 }
 0xd2a   :  { %v1036_v22 = vpop.permute.xlu1 %1035 }
 0xd2b   :  { %v3107_v23 = vadd.f32 %v1036_v22, %v1028_v21 }
 0xd2d   :  { %2593 = vtanh.f32 %v3107_v23 }
 0xd33   :  { %v2592_v24 = vpop.eup %2591 }
 0xd34   :  { %938 = vrot.lane.b32.xlu0 %v2592_v24, %s2780_s12 }
 0xd37   :  { %v2594_v25 = vpop.eup %2593 }
 0xd38   :  { %1041 = vrot.lane.b32.xlu1 %v2594_v25, %s2780_s12 }
 0xda6   :  { %v939_v26 = vpop.permute.xlu0 %938 }
 0xda7   :  { %v941_v27 = vmul.f32 %v2588_v11, %v939_v26 }
 0xda9   :  { %1050 = vrot.lane.b32.xlu1 %v941_v27, %s2780_s12 }
 0xdaa   :  { %v1042_v28 = vpop.permute.xlu1 %1041 }
 0xdab   :  { %v1044_v29 = vmul.f32 %v2590_v15, %v1042_v28 }
 0xdad   :  { %1046 = vrot.lane.b32.xlu0 %v1044_v29, %s2773_s1 }
 0xdb1   :  { %1153 = vrot.lane.b32.xlu0 %v1044_v29, %s2781_s2 }
 0xe1b   :  { %v1051_v31 = vpop.permute.xlu1 %1050 }
 0xe1f   :  { %v1047_v33 = vpop.permute.xlu0 %1046 }
 0xe20   :  { %v1053_v34 = vsel %vm215_vm3, %v1047_v33, %v1051_v31 }
 0xe21   :  { %2220 = vmatmul.mubr.msk.f32.vlgmr.msra.gmra.mrb[8].mxu1 %vm217_vm4, %v1053_v34 }
 0xe22   :  { %2463 = vmatpush3.bf16.msra.mxu1 %v2895_v5  ;;  %2268 = vmatprep.mubr.msk.f32.mxu1 %vm2778_vm0, %v2779_v1 }
 0xe23   :  { %v1154_v37 = vpop.permute.xlu0 %1153  ;;  %2464 = vmatprep.subr.bf16.mxu1 %v2777_v0 }
 0xe24   :  { %v1156_v38 = vsel %vm111_vm1, %v1152_v36, %v1154_v37 }
 0xe25   :  { %2235 = vmatmul.mubr.msk.f32.vlgmr.msra.gmra.mrb[10].mxu0 %vm113_vm2, %v1156_v38 }
 0xe26   :  { %2451 = vmatpush3.bf16.msra.mxu0 %v2928_v30  ;;  %2466 = vmatpush3.bf16.msra.mxu1 %v2898_v7 }
 0xe27   :  { %2452 = vmatprep.subr.bf16.mxu0 %v2777_v0  ;;  %2253 = vmatprep.mubr.msk.f32.mxu0 %vm2778_vm0, %v2779_v1 }
 0xe28   :  { %2467 = vmatprep.subr.bf16.mxu1 %v2777_v0 }
 0xe2a   :  { %2454 = vmatpush3.bf16.msra.mxu0 %v2931_v32  ;;  %2469 = vmatpush3.bf16.msra.mxu1 %v2902_v10 }
 0xe2b   :  { %2455 = vmatprep.subr.bf16.mxu0 %v2777_v0  ;;  %2470 = vmatprep.subr.bf16.mxu1 %v2777_v0 }
 0xe2e   :  { %2457 = vmatpush3.bf16.msra.mxu0 %v2935_v35 }
 0xe2f   :  { %2458 = vmatprep.subr.bf16.mxu0 %v2777_v0 }
 0xe32   :  { %2460 = vmatpush3.bf16.msra.mxu0 %v2940_v39 }
 0xe33   :  { %2482 = vmatprep.subr.bf16.mxu0 %v2777_v0 }
 0xef4   :  { %v1123_v40 = vpop.f32.mrb[8].mxu1 }
 0xef5   :  { %v1124_v41 = vadd.f32 %v2972_v47, %v1123_v40  ;;  %v2221_v42 = vpop.f32.mrb[9].mxu1 }
 0xef7   :  { %2595 = vtanh.f32 %v1124_v41  ;;  %v1904_v49 = vmul.f32 -1.442695, %v1124_v41 }
 0xef8   :  { %v1226_v43 = vpop.f32.mrb[10].mxu0 }
 0xef9   :  { %v1227_v44 = vadd.f32 %v2920_v13, %v1226_v43  ;;  %v2236_v45 = vpop.f32.mrb[11].mxu0 }
 0xefb   :  { %2597 = vtanh.f32 %v1227_v44  ;;  %v1906_v50 = vmul.f32 -1.442695, %v1227_v44 }
 0xefc   :  { %2599 = vpow2.f32 %v1904_v49 }
 0xefd   :  { %2601 = vpow2.f32 %v1906_v50 }
 0xf01   :  { %v2596_v46 = vpop.eup %2595 }
 0xf02   :  { %1136 = vrot.lane.b32.xlu1 %v2596_v46, %s2780_s12 }
 0xf05   :  { %v2598_v48 = vpop.eup %2597 }
 0xf06   :  { %1239 = vrot.lane.b32.xlu0 %v2598_v48, %s2780_s12  ;;  %v2600_v51 = vpop.eup %2599 }
 0xf07   :  { %v1130_v52 = vadd.f32 1.0, %v2600_v51  ;;  %v2602_v53 = vpop.eup %2601 }
 0xf08   :  { %v1233_v54 = vadd.f32 1.0, %v2602_v53 }
 0xf09   :  { %2603 = vrcp.f32 %v1130_v52 }
 0xf0a   :  { %2605 = vrcp.f32 %v1233_v54 }
 0xf13   :  { %v2604_v55 = vpop.eup %2603 }
 0xf14   :  { %v2606_v58 = vpop.eup %2605  ;;  %v1134_v61 = vmul.f32 %v2604_v55, %v3103_v20 }
 0xf15   :  { %v1237_v2 = vmul.f32 %v2606_v58, %v3107_v23 }
 0xf74   :  { %v1137_v56 = vpop.permute.xlu1 %1136 }
 0xf75   :  { %v1139_v57 = vmul.f32 %v2604_v55, %v1137_v56 }
 0xf77   :  { %1141 = vrot.lane.b32.xlu1 %v1139_v57, %s2773_s1 }
 0xf78   :  { %v1240_v59 = vpop.permute.xlu0 %1239 }
 0xf79   :  { %v1242_v60 = vmul.f32 %v2606_v58, %v1240_v59 }
 0xf7b   :  { %1244 = vrot.lane.b32.xlu0 %v1242_v60, %s2773_s1 }
 0xfe9   :  { %v1142_v62 = vpop.permute.xlu1 %1141 }
 0xfea   :  { %v3144_v63 = vadd.f32 %v1142_v62, %v1134_v61 }
 0xfec   :  { %2607 = vtanh.f32 %v3144_v63 }
 0xfed   :  { %v1245_v3 = vpop.permute.xlu0 %1244 }
 0xfee   :  { %v3148_v4 = vadd.f32 %v1245_v3, %v1237_v2 }
 0xff0   :  { %2609 = vtanh.f32 %v3148_v4 }
 0xff6   :  { %v2608_v6 = vpop.eup %2607 }
 0xff7   :  { %1147 = vrot.lane.b32.xlu1 %v2608_v6, %s2780_s12 }
 0xffa   :  { %v2610_v8 = vpop.eup %2609 }
 0xffb   :  { %1250 = vrot.lane.b32.xlu0 %v2610_v8, %s2780_s12 }
0x1069   :  { %v1148_v9 = vpop.permute.xlu1 %1147 }
0x106a   :  { %v1150_v11 = vmul.f32 %v2604_v55, %v1148_v9 }
0x106c   :  { %1259 = vrot.lane.b32.xlu0 %v1150_v11, %s2780_s12 }
0x106d   :  { %v1251_v12 = vpop.permute.xlu0 %1250 }
0x106e   :  { %v1253_v14 = vmul.f32 %v2606_v58, %v1251_v12  ;;  %v1570_v58 = vld [vmem:[#allocation2 + $0xe] sm:$0x3] }
0x1070   :  { %1255 = vrot.lane.b32.xlu1 %v1253_v14, %s2773_s1 }
0x1074   :  { %1362 = vrot.lane.b32.xlu1 %v1253_v14, %s2781_s2 }
0x10de   :  { %v1260_v15 = vpop.permute.xlu0 %1259 }
0x10e2   :  { %v1256_v16 = vpop.permute.xlu1 %1255 }
0x10e3   :  { %v1262_v17 = vsel %vm215_vm3, %v1256_v16, %v1260_v15 }
0x10e4   :  { %2254 = vmatmul.mubr.msk.f32.vlgmr.msra.gmra.mrb[12].mxu0 %vm217_vm4, %v1262_v17 }
0x10e5   :  { %2484 = vmatpush3.bf16.msra.mxu0 %v2895_v5  ;;  %2302 = vmatprep.mubr.msk.f32.mxu0 %vm2778_vm0, %v2779_v1 }
0x10e6   :  { %v1363_v19 = vpop.permute.xlu1 %1362  ;;  %2485 = vmatprep.subr.bf16.mxu0 %v2777_v0 }
0x10e7   :  { %v1365_v20 = vsel %vm111_vm1, %v1361_v18, %v1363_v19 }
0x10e8   :  { %2269 = vmatmul.mubr.msk.f32.vlgmr.msra.gmra.mrb[10].mxu1 %vm113_vm2, %v1365_v20 }
0x10e9   :  { %2472 = vmatpush3.bf16.msra.mxu1 %v2928_v30  ;;  %2487 = vmatpush3.bf16.msra.mxu0 %v2898_v7 }
0x10ea   :  { %2473 = vmatprep.subr.bf16.mxu1 %v2777_v0  ;;  %2287 = vmatprep.mubr.msk.f32.mxu1 %vm2778_vm0, %v2779_v1 }
0x10eb   :  { %2488 = vmatprep.subr.bf16.mxu0 %v2777_v0 }
0x10ed   :  { %2475 = vmatpush3.bf16.msra.mxu1 %v2931_v32  ;;  %2490 = vmatpush3.bf16.msra.mxu0 %v2902_v10 }
0x10ee   :  { %2476 = vmatprep.subr.bf16.mxu1 %v2777_v0  ;;  %2491 = vmatprep.subr.bf16.mxu0 %v2777_v0 }
0x10f1   :  { %2478 = vmatpush3.bf16.msra.mxu1 %v2935_v35 }
0x10f2   :  { %2479 = vmatprep.subr.bf16.mxu1 %v2777_v0 }
0x10f5   :  { %2481 = vmatpush3.bf16.msra.mxu1 %v2940_v39 }
0x10f6   :  { %2503 = vmatprep.subr.bf16.mxu1 %v2777_v0 }
0x11b7   :  { %v1332_v5 = vpop.f32.mrb[12].mxu0 }
0x11b8   :  { %v1333_v7 = vadd.f32 %v2972_v47, %v1332_v5  ;;  %v2255_v21 = vpop.f32.mrb[13].mxu0 }
0x11ba   :  { %2611 = vtanh.f32 %v1333_v7  ;;  %v1908_v26 = vmul.f32 -1.442695, %v1333_v7 }
0x11bb   :  { %v1435_v22 = vpop.f32.mrb[10].mxu1 }
0x11bc   :  { %v1436_v10 = vadd.f32 %v2920_v13, %v1435_v22  ;;  %v2270_v23 = vpop.f32.mrb[11].mxu1 }
0x11be   :  { %2613 = vtanh.f32 %v1436_v10  ;;  %v1910_v27 = vmul.f32 -1.442695, %v1436_v10 }
0x11bf   :  { %2615 = vpow2.f32 %v1908_v26 }
0x11c0   :  { %2617 = vpow2.f32 %v1910_v27 }
0x11c4   :  { %v2612_v24 = vpop.eup %2611 }
0x11c5   :  { %1345 = vrot.lane.b32.xlu0 %v2612_v24, %s2780_s12 }
0x11c8   :  { %v2614_v25 = vpop.eup %2613 }
0x11c9   :  { %1448 = vrot.lane.b32.xlu1 %v2614_v25, %s2780_s12  ;;  %v2616_v28 = vpop.eup %2615 }
0x11ca   :  { %v1339_v29 = vadd.f32 1.0, %v2616_v28  ;;  %v2618_v31 = vpop.eup %2617 }
0x11cb   :  { %v1442_v33 = vadd.f32 1.0, %v2618_v31 }
0x11cc   :  { %2619 = vrcp.f32 %v1339_v29 }
0x11cd   :  { %2621 = vrcp.f32 %v1442_v33 }
0x11d6   :  { %v2620_v34 = vpop.eup %2619 }
0x11d7   :  { %v2622_v38 = vpop.eup %2621  ;;  %v1343_v42 = vmul.f32 %v2620_v34, %v3144_v63 }
0x11d8   :  { %v1446_v45 = vmul.f32 %v2622_v38, %v3148_v4 }
0x1237   :  { %v1346_v36 = vpop.permute.xlu0 %1345 }
0x1238   :  { %v1348_v37 = vmul.f32 %v2620_v34, %v1346_v36 }
0x123a   :  { %1350 = vrot.lane.b32.xlu0 %v1348_v37, %s2773_s1 }
0x123b   :  { %v1449_v40 = vpop.permute.xlu1 %1448 }
0x123c   :  { %v1451_v41 = vmul.f32 %v2622_v38, %v1449_v40 }
0x123e   :  { %1453 = vrot.lane.b32.xlu1 %v1451_v41, %s2773_s1 }
0x12ac   :  { %v1351_v43 = vpop.permute.xlu0 %1350 }
0x12ad   :  { %v3185_v44 = vadd.f32 %v1351_v43, %v1343_v42 }
0x12af   :  { %2623 = vtanh.f32 %v3185_v44 }
0x12b0   :  { %v1454_v46 = vpop.permute.xlu1 %1453 }
0x12b1   :  { %v3189_v48 = vadd.f32 %v1454_v46, %v1446_v45  ;;  %v1780_v46 = vld [vmem:[#allocation8 + $0x8] sm:$0xff] }
0x12b3   :  { %2625 = vtanh.f32 %v3189_v48 }
0x12b9   :  { %v2624_v49 = vpop.eup %2623 }
0x12ba   :  { %1356 = vrot.lane.b32.xlu0 %v2624_v49, %s2780_s12 }
0x12bd   :  { %v2626_v50 = vpop.eup %2625 }
0x12be   :  { %1459 = vrot.lane.b32.xlu1 %v2626_v50, %s2780_s12  ;;  %v1782_v50 = vld [vmem:[#allocation8 + $0x18] sm:$0xff] }
0x132c   :  { %v1357_v51 = vpop.permute.xlu0 %1356 }
0x132d   :  { %v1359_v52 = vmul.f32 %v2620_v34, %v1357_v51 }
0x132f   :  { %1468 = vrot.lane.b32.xlu1 %v1359_v52, %s2780_s12 }
0x1330   :  { %v1460_v53 = vpop.permute.xlu1 %1459 }
0x1331   :  { %v1462_v54 = vmul.f32 %v2622_v38, %v1460_v53 }
0x1333   :  { %1464 = vrot.lane.b32.xlu0 %v1462_v54, %s2773_s1 }
0x1337   :  { %1571 = vrot.lane.b32.xlu0 %v1462_v54, %s2781_s2 }
0x13a1   :  { %v1469_v55 = vpop.permute.xlu1 %1468 }
0x13a5   :  { %v1465_v56 = vpop.permute.xlu0 %1464 }
0x13a6   :  { %v1471_v57 = vsel %vm215_vm3, %v1465_v56, %v1469_v55 }
0x13a7   :  { %2288 = vmatmul.mubr.msk.f32.vlgmr.msra.gmra.mrb[12].mxu1 %vm217_vm4, %v1471_v57  ;;  %v1917_v57 = vld [vmem:[%s3254_s6] ss:$0 sm:$0xff] }
0x13a8   :  { %2332 = vmatprep.mubr.msk.f32.mxu1 %vm2778_vm0, %v2779_v1 }
0x13a9   :  { %v1572_v59 = vpop.permute.xlu0 %1571 }
0x13aa   :  { %v1574_v60 = vsel %vm111_vm1, %v1570_v58, %v1572_v59 }
0x13ab   :  { %2303 = vmatmul.mubr.msk.f32.vlgmr.msra.gmra.mrb[14].mxu0 %vm113_vm2, %v1574_v60 }
0x13ac   :  { %2493 = vmatpush3.bf16.msra.mxu0 %v2928_v30  ;;  %2321 = vmatprep.mubr.msk.f32.mxu0 %vm2778_vm0, %v2779_v1 }
0x13ad   :  { %2494 = vmatprep.subr.bf16.mxu0 %v2777_v0 }
0x13b0   :  { %2496 = vmatpush3.bf16.msra.mxu0 %v2931_v32 }
0x13b1   :  { %2497 = vmatprep.subr.bf16.mxu0 %v2777_v0 }
0x13b4   :  { %2499 = vmatpush3.bf16.msra.mxu0 %v2935_v35 }
0x13b5   :  { %2500 = vmatprep.subr.bf16.mxu0 %v2777_v0 }
0x13b8   :  { %2502 = vmatpush3.bf16.msra.mxu0 %v2940_v39 }
0x147a   :  { %v1541_v61 = vpop.f32.mrb[12].mxu1 }
0x147b   :  { %v1542_v62 = vadd.f32 %v2972_v47, %v1541_v61  ;;  %v2289_v63 = vpop.f32.mrb[13].mxu1 }
0x147d   :  { %2627 = vtanh.f32 %v1542_v62  ;;  %v1912_v35 = vmul.f32 -1.442695, %v1542_v62 }
0x147e   :  { %v1644_v30 = vpop.f32.mrb[14].mxu0 }
0x147f   :  { %v1645_v1 = vadd.f32 %v2920_v13, %v1644_v30  ;;  %v2304_v2 = vpop.f32.mrb[15].mxu0 }
0x1481   :  { %2629 = vtanh.f32 %v1645_v1  ;;  %v1914_v4 = vmul.f32 -1.442695, %v1645_v1 }
0x1482   :  { %2631 = vpow2.f32 %v1912_v35 }
0x1483   :  { %2633 = vpow2.f32 %v1914_v4 }
0x1487   :  { %v2628_v3 = vpop.eup %2627 }
0x1488   :  { %1554 = vrot.lane.b32.xlu1 %v2628_v3, %s2780_s12 }
0x148b   :  { %v2630_v32 = vpop.eup %2629 }
0x148c   :  { %1657 = vrot.lane.b32.xlu0 %v2630_v32, %s2780_s12  ;;  %v2632_v39 = vpop.eup %2631 }
0x148d   :  { %v1548_v6 = vadd.f32 1.0, %v2632_v39  ;;  %v2634_v8 = vpop.eup %2633 }
0x148e   :  { %v1651_v9 = vadd.f32 1.0, %v2634_v8 }
0x148f   :  { %2635 = vrcp.f32 %v1548_v6 }
0x1490   :  { %2637 = vrcp.f32 %v1651_v9 }
0x1499   :  { %v2636_v11 = vpop.eup %2635 }
0x149a   :  { %v2638_v14 = vpop.eup %2637  ;;  %v1552_v17 = vmul.f32 %v2636_v11, %v3185_v44 }
0x149b   :  { %v1655_v20 = vmul.f32 %v2638_v14, %v3189_v48  ;;  %v1781_v48 = vld [vmem:[#allocation8 + $0x10] sm:$0xff] }
0x149c   :  { %v2507_v51 = vpack.c.bf16 %v1782_v50, %v1781_v48 }
0x14fa   :  { %v1555_v13 = vpop.permute.xlu1 %1554 }
0x14fb   :  { %v1557_v12 = vmul.f32 %v2636_v11, %v1555_v13 }
0x14fd   :  { %1559 = vrot.lane.b32.xlu1 %v1557_v12, %s2773_s1 }
0x14fe   :  { %v1658_v15 = vpop.permute.xlu0 %1657 }
0x14ff   :  { %v1660_v16 = vmul.f32 %v2638_v14, %v1658_v15 }
0x1501   :  { %1662 = vrot.lane.b32.xlu0 %v1660_v16, %s2773_s1 }
0x156f   :  { %v1560_v18 = vpop.permute.xlu1 %1559 }
0x1570   :  { %v1562_v19 = vadd.f32 %v1560_v18, %v1552_v17 }
0x1572   :  { %2639 = vtanh.f32 %v1562_v19 }
0x1573   :  { %v1663_v5 = vpop.permute.xlu0 %1662 }
0x1574   :  { %v1665_v7 = vadd.f32 %v1663_v5, %v1655_v20 }
0x1576   :  { %2641 = vtanh.f32 %v1665_v7 }
0x157c   :  { %v2640_v21 = vpop.eup %2639 }
0x157d   :  { %1565 = vrot.lane.b32.xlu1 %v2640_v21, %s2780_s12 }
0x1580   :  { %v2642_v22 = vpop.eup %2641 }
0x1581   :  { %1668 = vrot.lane.b32.xlu0 %v2642_v22, %s2780_s12 }
0x15ef   :  { %v1566_v10 = vpop.permute.xlu1 %1565 }
0x15f0   :  { %v1568_v23 = vmul.f32 %v2636_v11, %v1566_v10 }
0x15f2   :  { %1677 = vrot.lane.b32.xlu0 %v1568_v23, %s2780_s12 }
0x15f3   :  { %v1669_v24 = vpop.permute.xlu0 %1668 }
0x15f4   :  { %v1671_v25 = vmul.f32 %v2638_v14, %v1669_v24 }
0x15f6   :  { %1673 = vrot.lane.b32.xlu1 %v1671_v25, %s2773_s1 }
0x1664   :  { %v1678_v26 = vpop.permute.xlu0 %1677 }
0x1668   :  { %v1674_v27 = vpop.permute.xlu1 %1673 }
0x1669   :  { %v1680_v28 = vsel %vm215_vm3, %v1674_v27, %v1678_v26 }
0x166a   :  { %2322 = vmatmul.mubr.msk.f32.vlgmr.msra.gmra.mrb[16].mxu0 %vm217_vm4, %v1680_v28 }
0x173d   :  { %v1750_v29 = vpop.f32.mrb[16].mxu0 }
0x173e   :  { %v1751_v31 = vadd.f32 %v2972_v47, %v1750_v29  ;;  %v2323_v33 = vpop.f32.mrb[17].mxu0  ;;  %v1779_v47 = vld [vmem:[#allocation8] sm:$0xff] }
0x173f   :  { %v2504_v49 = vpack.c.bf16 %v1780_v46, %v1779_v47 }
0x1740   :  { %2643 = vtanh.f32 %v1751_v31  ;;  %v1916_v36 = vmul.f32 -1.442695, %v1751_v31 }
0x1741   :  { %2505 = vmatpush3.bf16.msra.mxu1 %v2504_v49 }
0x1742   :  { %2645 = vpow2.f32 %v1916_v36  ;;  %2506 = vmatprep.subr.bf16.mxu1 %v2777_v0 }
0x1745   :  { %2508 = vmatpush3.bf16.msra.mxu1 %v2507_v51 }
0x174a   :  { %v2644_v34 = vpop.eup %2643 }
0x174b   :  { %1763 = vrot.lane.b32.xlu1 %v2644_v34, %s2780_s12 }
0x174c   :  { %v2646_v37 = vpop.eup %2645 }
0x174d   :  { %v1757_v38 = vadd.f32 1.0, %v2646_v37 }
0x174f   :  { %2647 = vrcp.f32 %v1757_v38 }
0x1759   :  { %v2648_v40 = vpop.eup %2647 }
0x175a   :  { %v1761_v43 = vmul.f32 %v2648_v40, %v1562_v19 }
0x17bd   :  { %v1764_v41 = vpop.permute.xlu1 %1763 }
0x17be   :  { %v1766_v42 = vmul.f32 %v2648_v40, %v1764_v41 }
0x17c0   :  { %1768 = vrot.lane.b32.xlu0 %v1766_v42, %s2773_s1 }
0x1832   :  { %v1769_v44 = vpop.permute.xlu0 %1768 }
0x1833   :  { %v1771_v45 = vadd.f32 %v1769_v44, %v1761_v43 }
0x1835   :  { %2649 = vtanh.f32 %v1771_v45 }
0x183f   :  { %v2650_v52 = vpop.eup %2649 }
0x1840   :  { %1774 = vrot.lane.b32.xlu1 %v2650_v52, %s2780_s12 }
0x18b2   :  { %v1775_v53 = vpop.permute.xlu1 %1774 }
0x18b3   :  { %v1777_v54 = vmul.f32 %v2648_v40, %v1775_v53 }
0x18b5   :  { %v1778_v55 = vmax.f32 %v1777_v54, 0.0 }
0x18b7   :  { %1791 = vrot.lane.b32.xlu0 %v1778_v55, %s2773_s1 }
0x1929   :  { %v1792_v56 = vpop.permute.xlu0 %1791 }
0x192a   :  { %2333 = vmatmul.mubr.msk.f32.vlgmr.msra.gmra.mrb[14].mxu1 %vm215_vm3, %v1792_v56 }
0x19fd   :  { %v1861_v58 = vpop.f32.mrb[14].mxu1 }
0x19fe   :  { %v1862_v0 = vadd.f32 %v1917_v57, %v1861_v58  ;;  %v2334_v59 = vpop.f32.mrb[15].mxu1 }
0x1a00   :  { %1865 = vst [vmem:[#allocation10] sm:$0x3] %v1862_v0 }
0x1a01   :  { %2750 = shalt.err (!%p2747_p8)
}
0x1a02   :  { %s2751_s15 = scalar_lea.hbm %s3255_s7, 32 }
0x1a03   :  { %p2752_p9 = scmp.ne.s32.totalorder %s3255_s7, %s2751_s15  ;;  %p2755_p10 = scmp.lt.u32.totalorder %s2751_s15, %s3255_s7 }
0x1a05   :  { %p2757_p11 = pnand %p2755_p10, %p2752_p9 }
0x1a07   :  { %2760 = shalt.err (!%p2757_p11)
}
0x1a08   :  { %1875 = dma.vmem_to_hbm [thread:$0]  %s1873_s10, 32, %s3255_s7, [#allocation4]  }
0x1a09   :  { %2767 = dma.done.wait [#allocation4], 32  }
0x1a0a   :  { %2768 = vsyncadd [#allocation4], 4294967264 }
0x1a0b   :  { %1879 = vsyncpa [#allocation3], 1 }
0x1a0c   :  { %1880 = vsyncpa [#allocation6], 1 }
0x1a0d   :  { %1881 = vsyncpa [#allocation9], 1 }
0x1a0e   :  { %1882 = vsyncpa [#allocation4], 1 }

</bundles_post_ra>
